<compile_context>
chip_gen: v5e
topology: v5e:2x2
jax: 0.10.0
libtpu: 0.0.40
codegen_flags: <defaults>
</compile_context>

<pallas_src>
import functools

import numpy as np
import jax
import jax.numpy as jnp
from jax import lax
from jax.experimental import pallas as pl
from jax.experimental.pallas import tpu as pltpu

EPS = 1e-8
LANE = 128


def _round_up(n, m):
    return ((n + m - 1) // m) * m


# ----------------------------------------------------------------------------
# LMU state-space matrices (Legendre delay network), ZOH-discretized, dt = 1.
# ----------------------------------------------------------------------------
def _np_expm(M, order=24):
    """Scaling-and-squaring + Taylor expm (float64, host-side setup only)."""
    norm = np.linalg.norm(M, ord=np.inf)
    s = max(0, int(np.ceil(np.log2(max(norm, 1e-12)))))
    A = M / (2.0 ** s)
    E = np.eye(M.shape[0])
    T = np.eye(M.shape[0])
    for k in range(1, order + 1):
        T = T @ A / k
        E = E + T
    for _ in range(s):
        E = E @ E
    return E


def _lmu_state_space(memory_size, theta):
    Q = np.arange(memory_size)
    R = (2 * Q + 1)[:, None] / float(theta)
    j, i = np.meshgrid(Q, Q)
    A = np.where(i < j, -1.0, (-1.0) ** (i - j + 1)) * R          # (M, M)
    B = ((-1.0) ** Q)[:, None] * R                                 # (M, 1)
    # ZOH:  expm([[A, B], [0, 0]]) = [[Ad, Bd], [0, I]]
    aug = np.zeros((memory_size + 1, memory_size + 1))
    aug[:memory_size, :memory_size] = A
    aug[:memory_size, memory_size:] = B
    E = _np_expm(aug)
    Ad = E[:memory_size, :memory_size]
    Bd = E[:memory_size, memory_size:]
    return Ad.astype(np.float32), Bd.astype(np.float32)


# ----------------------------------------------------------------------------
# Deterministic parameter initialization (shapes from LMU_Pred.__init__)
# ----------------------------------------------------------------------------
def init_params(key, in_dim, out_len, hidden_size, memory_size, num_layers, theta):
    n_keys = 2 + 5 * num_layers + 2
    keys = iter(jax.random.split(key, n_keys))

    def unif(k, shape, fan_in):
        bound = 1.0 / np.sqrt(fan_in)
        return jax.random.uniform(k, shape, jnp.float32, -bound, bound)

    params = {
        # DAIN 'full': mean/scaling linear layers identity-initialized, no bias
        "dain_mean_w": jnp.eye(in_dim, dtype=jnp.float32),
        "dain_scale_w": jnp.eye(in_dim, dtype=jnp.float32),
        "dain_gate_w": unif(next(keys), (in_dim, in_dim), in_dim),
        "dain_gate_b": unif(next(keys), (1, in_dim), in_dim),
    }
    Ad, Bd = _lmu_state_space(memory_size, theta)
    params["A"] = jnp.asarray(Ad)          # (M, M)
    params["B"] = jnp.asarray(Bd)          # (M, 1)

    layers = []
    for l in range(num_layers):
        d_in = in_dim if l == 0 else hidden_size
        layers.append(dict(
            e_x=unif(next(keys), (1, d_in), d_in),
            e_h=unif(next(keys), (1, hidden_size), hidden_size),
            e_m=jnp.zeros((1, memory_size), jnp.float32),
            W_x=unif(next(keys), (hidden_size, d_in), d_in),
            W_h=unif(next(keys), (hidden_size, hidden_size), hidden_size),
            W_m=unif(next(keys), (hidden_size, memory_size), memory_size),
        ))
    params["layers"] = layers

    fc_in = num_layers * hidden_size
    params["fc_w"] = unif(next(keys), (out_len, fc_in), fc_in)
    params["fc_b"] = unif(next(keys), (1, out_len), fc_in)
    return params


# ----------------------------------------------------------------------------
# Host-side weight folding / padding (no in-kernel transposes, concats or
# misaligned lane slices; memory state padded to a 128-lane multiple).
# ----------------------------------------------------------------------------
def prepare_inputs(x, params, num_layers, compute_dtype):
    A_T = params["A"].T                      # (M, M)
    B_T = params["B"].T                      # (1, M)
    M = A_T.shape[0]
    Mp = _round_up(M, LANE)                  # padded memory width (aligned slices)

    def padto(a, rows, cols):
        return jnp.pad(a, ((0, rows - a.shape[0]), (0, cols - a.shape[1])))

    inputs = [
        jnp.transpose(x, (2, 0, 1)).astype(jnp.float32),   # (S, B, D): time leading
        params["dain_mean_w"].T.astype(jnp.float32),
        params["dain_scale_w"].T.astype(jnp.float32),
        params["dain_gate_w"].T.astype(jnp.float32),
        params["dain_gate_b"].astype(jnp.float32),
    ]
    for lp in params["layers"]:
        d_in = lp["e_x"].shape[1]
        H = lp["W_h"].shape[0]
        # Exact fold of the width-1 'u' path into the memory update:
        #   m' = x@Bx + h@Bh + m@(A' + e_m'B')
        Bx = lp["e_x"].T @ B_T               # (d_in, M)
        Bh = lp["e_h"].T @ B_T               # (H, M)
        Ap = A_T + lp["e_m"].T @ B_T         # (M, M)
        # Fused, lane-aligned weights: mix = inp@W_in + h@W_hid = [m_partial(pad Mp) | h_pre]
        W_in = jnp.concatenate([padto(Bx, d_in, Mp), lp["W_x"].T], axis=1)   # (d_in, Mp+H)
        W_hid = jnp.concatenate([padto(Bh, H, Mp), lp["W_h"].T], axis=1)     # (H,   Mp+H)
        W_mem = padto(Ap, Mp, Mp)                                            # (Mp, Mp)
        W_m2h = padto(lp["W_m"].T, Mp, H)                                    # (Mp, H)
        inputs += [w.astype(compute_dtype) for w in (W_in, W_hid, W_mem, W_m2h)]

    out_len = params["fc_w"].shape[0]
    out_pad = _round_up(out_len, LANE)       # lane-dense output store
    fcT = params["fc_w"].T                   # (L*H, out_len)
    H = params["layers"][0]["W_h"].shape[0]
    for l in range(num_layers):              # per-layer head blocks (no lane concat in kernel)
        inputs.append(padto(fcT[l * H:(l + 1) * H, :], H, out_pad).astype(compute_dtype))
    inputs.append(padto(params["fc_b"], 1, out_pad).astype(jnp.float32))
    return inputs, out_len, out_pad


# ----------------------------------------------------------------------------
# Fused Pallas kernel: DAIN -> stacked LMU recurrence -> tanh -> Linear head
# ----------------------------------------------------------------------------
def lmu_pred_kernel(num_layers, unroll, compute_dtype, *refs):
    x_ref = refs[0]
    mean_wT = refs[1][...]
    scale_wT = refs[2][...]
    gate_wT = refs[3][...]
    gate_b = refs[4][...]
    off = 5
    # Weights hoisted out of the time loop (loaded once, tiny; avoids per-unrolled-iter vld).
    layer_w = [tuple(refs[off + 4 * l + k][...] for k in range(4))
               for l in range(num_layers)]
    off += 4 * num_layers
    fc_w = [refs[off + l][...] for l in range(num_layers)]
    fc_b = refs[off + num_layers][...]
    out_ref = refs[off + num_layers + 1]

    f32 = jnp.float32
    seq_len, bt, D = x_ref.shape
    hidden = layer_w[0][1].shape[0]          # W_hid: (H, Mp+H)
    mem_pad = layer_w[0][2].shape[0]         # W_mem: (Mp, Mp)
    inv_S = f32(1.0 / seq_len)

    # ---------------- DAIN 'full': one streaming stats pass, folded into scale/shift --------
    def stats_step(t, c):
        s1, s2 = c
        xt = x_ref[t].astype(f32)            # (Bt, D) per-timestep read of the ref
        return s1 + xt, s2 + xt * xt

    z_bd = jnp.zeros((bt, D), f32)
    s1, s2 = lax.fori_loop(0, seq_len, stats_step, (z_bd, z_bd), unroll=unroll)

    avg = s1 * inv_S                                                   # mean_t(x)
    ex2 = s2 * inv_S                                                   # mean_t(x^2)
    a = jnp.dot(avg, mean_wT, preferred_element_type=f32)              # adaptive mean
    var = jnp.maximum(ex2 - 2.0 * a * avg + a * a, 0.0)                # mean_t((x-a)^2)
    std = jnp.sqrt(var + EPS)
    ast = jnp.dot(std, scale_wT, preferred_element_type=f32)           # adaptive std
    ast = jnp.where(ast <= EPS, jnp.ones_like(ast), ast)
    inv_ast = pl.reciprocal(ast, approx=True)                          # EUP slot
    avg2 = (avg - a) * inv_ast                                         # mean_t(normalized x)
    gate = jax.nn.sigmoid(
        jnp.dot(avg2, gate_wT, preferred_element_type=f32) + gate_b)
    scale = gate * inv_ast                                             # x_dain = x*scale+shift
    shift = -a * scale

    # ---------------- stacked LMU recurrence (4 lane-aligned dots / layer / step) ------------
    h0 = tuple(jnp.zeros((bt, hidden), f32) for _ in range(num_layers))
    m0 = tuple(jnp.zeros((bt, mem_pad), f32) for _ in range(num_layers))

    def step(t, carry):
        hs, ms = carry
        inp = x_ref[t].astype(f32) * scale + shift                     # DAIN: 1 FMA per step
        new_h, new_m = [], []
        for l in range(num_layers):
            W_in, W_hid, W_mem, W_m2h = layer_w[l]
            h, m = hs[l], ms[l]
            mix = (jnp.dot(inp.astype(compute_dtype), W_in,
                           preferred_element_type=f32)
                   + jnp.dot(h.astype(compute_dtype), W_hid,
                             preferred_element_type=f32))              # (Bt, Mp+H)
            m = mix[:, :mem_pad] + jnp.dot(m.astype(compute_dtype), W_mem,
                                           preferred_element_type=f32)  # (Bt, Mp)
            h = jnp.tanh(mix[:, mem_pad:]
                         + jnp.dot(m.astype(compute_dtype), W_m2h,
                                   preferred_element_type=f32))          # (Bt, H)
            new_h.append(h)
            new_m.append(m)
            inp = h
        return tuple(new_h), tuple(new_m)

    hs, _ = lax.fori_loop(0, seq_len, step, (h0, m0), unroll=unroll)

    # ---------------- tanh head + Linear (per-layer accumulating dots, lane-dense store) -----
    # Dropout(0.1): identity in inference mode.
    acc = jnp.dot(jnp.tanh(hs[0]).astype(compute_dtype), fc_w[0],
                  preferred_element_type=f32)
    for l in range(1, num_layers):
        acc = acc + jnp.dot(jnp.tanh(hs[l]).astype(compute_dtype), fc_w[l],
                            preferred_element_type=f32)
    out_ref[...] = acc + fc_b


# ----------------------------------------------------------------------------
# Wrapper: VMEM-aware batch tiling + lane-dense output + megacore-friendly grid
# ----------------------------------------------------------------------------
def _choose_batch_tile(batch, S, D, requested):
    if requested is not None:
        ok = (0 < requested <= batch and batch % requested == 0
              and (requested % 8 == 0 or requested == batch))
        if ok:
            return requested
    if batch % 8 != 0 or batch <= 8:
        return batch
    lane_d = _round_up(max(D, 1), LANE)
    budget = 32 << 20                     # generation-safe scoped-VMEM budget for x streaming

    def tile_bytes(t):                    # double-buffered (S, bt, D) f32 block, lane-padded
        return 2 * S * _round_up(t, 8) * lane_d * 4

    cands = [t for t in range(8, batch + 1, 8)
             if batch % t == 0 and tile_bytes(t) <= budget]
    if not cands:
        return 8
    best = max(cands)
    if best == batch:                     # prefer >= 2 grid steps so both v7x TCs get work
        smaller = [t for t in cands if t < batch]
        if smaller:
            best = max(smaller)
    return best


def lmu_pred_forward(x, params, num_layers, *, batch_tile=None, unroll=8,
                     compute_dtype=jnp.bfloat16):
    inputs, out_len, out_pad = prepare_inputs(x, params, num_layers, compute_dtype)
    x_sbd = inputs[0]
    S, batch, D = x_sbd.shape

    bt = _choose_batch_tile(batch, S, D, batch_tile)
    grid = (batch // bt,)

    def full_spec(arr):
        zeros = (0,) * arr.ndim
        return pl.BlockSpec(arr.shape, lambda b, _z=zeros: _z)

    in_specs = [pl.BlockSpec((S, bt, D), lambda b: (0, b, 0))]
    in_specs += [full_spec(a) for a in inputs[1:]]
    out_spec = pl.BlockSpec((bt, out_pad), lambda b: (b, 0))

    # Explicit VMEM budget: double-buffered x block + resident weights + margin.
    lane_d = _round_up(max(D, 1), LANE)
    x_block_bytes = 2 * S * _round_up(bt, 8) * lane_d * 4
    w_bytes = sum(int(np.prod(a.shape)) * a.dtype.itemsize for a in inputs[1:])
    est = x_block_bytes + 2 * w_bytes + (2 << 20)
    vmem_limit = int(min(max(2 * est, 32 << 20), 56 << 20))

    kernel = functools.partial(lmu_pred_kernel, num_layers,
                               max(1, min(unroll, S)), compute_dtype)
    y_pad = pl.pallas_call(
        kernel,
        out_shape=jax.ShapeDtypeStruct((batch, out_pad), jnp.float32),
        grid=grid,
        in_specs=in_specs,
        out_specs=out_spec,
        compiler_params=pltpu.CompilerParams(
            dimension_semantics=("parallel",),
            vmem_limit_bytes=vmem_limit),
    )(*inputs)
    return y_pad[:, :out_len]


if __name__ == "__main__":
    # Small, forward-consistent shapes.
    batch, in_dim, seq_len = 2, 4, 8
    out_len, hidden_size, memory_size = 4, 32, 16
    num_layers, theta = 2, 8.0

    key = jax.random.PRNGKey(0)
    k_x, k_p = jax.random.split(key)
    x = jax.random.normal(k_x, (batch, in_dim, seq_len), dtype=jnp.float32)
    params = init_params(k_p, in_dim, out_len, hidden_size, memory_size,
                         num_layers, theta)

    y = lmu_pred_forward(x, params, num_layers)
    y = jax.block_until_ready(y)

    assert y.shape == (batch, out_len), y.shape
    assert bool(jnp.all(jnp.isfinite(y)))
    print("KERNEL_OK")
</pallas_src>

<mosaic_0001>
module attributes {stable_mosaic.version = 11 : i64} {
  func.func @lmu_pred_kernel(%arg0: i32, %arg1: memref<8x2x4xf32, #tpu.memory_space<vmem>>, %arg2: memref<4x4xf32, #tpu.memory_space<vmem>>, %arg3: memref<4x4xf32, #tpu.memory_space<vmem>>, %arg4: memref<4x4xf32, #tpu.memory_space<vmem>>, %arg5: memref<1x4xf32, #tpu.memory_space<vmem>>, %arg6: memref<4x160xbf16, #tpu.memory_space<vmem>>, %arg7: memref<32x160xbf16, #tpu.memory_space<vmem>>, %arg8: memref<128x128xbf16, #tpu.memory_space<vmem>>, %arg9: memref<128x32xbf16, #tpu.memory_space<vmem>>, %arg10: memref<32x160xbf16, #tpu.memory_space<vmem>>, %arg11: memref<32x160xbf16, #tpu.memory_space<vmem>>, %arg12: memref<128x128xbf16, #tpu.memory_space<vmem>>, %arg13: memref<128x32xbf16, #tpu.memory_space<vmem>>, %arg14: memref<32x128xbf16, #tpu.memory_space<vmem>>, %arg15: memref<32x128xbf16, #tpu.memory_space<vmem>>, %arg16: memref<1x128xf32, #tpu.memory_space<vmem>>, %arg17: memref<2x128xf32, #tpu.memory_space<vmem>>) attributes {dimension_semantics = [#tpu.dimension_semantics<parallel>], iteration_bounds = array<i64: 1>, scalar_prefetch = 0 : i64, scratch_operands = 0 : i64, tpu.core_type = #tpu.core_type<tc>, window_params = [{transform_indices = @transform_0, window_bounds = array<i64: 8, 2, 4>}, {pipeline_mode = #tpu.pipeline_mode<synchronous>, transform_indices = @transform_1, window_bounds = array<i64: 4, 4>}, {pipeline_mode = #tpu.pipeline_mode<synchronous>, transform_indices = @transform_2, window_bounds = array<i64: 4, 4>}, {pipeline_mode = #tpu.pipeline_mode<synchronous>, transform_indices = @transform_3, window_bounds = array<i64: 4, 4>}, {pipeline_mode = #tpu.pipeline_mode<synchronous>, transform_indices = @transform_4, window_bounds = array<i64: 1, 4>}, {pipeline_mode = #tpu.pipeline_mode<synchronous>, transform_indices = @transform_5, window_bounds = array<i64: 4, 160>}, {pipeline_mode = #tpu.pipeline_mode<synchronous>, transform_indices = @transform_6, window_bounds = array<i64: 32, 160>}, {pipeline_mode = #tpu.pipeline_mode<synchronous>, transform_indices = @transform_7, window_bounds = array<i64: 128, 128>}, {pipeline_mode = #tpu.pipeline_mode<synchronous>, transform_indices = @transform_8, window_bounds = array<i64: 128, 32>}, {pipeline_mode = #tpu.pipeline_mode<synchronous>, transform_indices = @transform_9, window_bounds = array<i64: 32, 160>}, {pipeline_mode = #tpu.pipeline_mode<synchronous>, transform_indices = @transform_10, window_bounds = array<i64: 32, 160>}, {pipeline_mode = #tpu.pipeline_mode<synchronous>, transform_indices = @transform_11, window_bounds = array<i64: 128, 128>}, {pipeline_mode = #tpu.pipeline_mode<synchronous>, transform_indices = @transform_12, window_bounds = array<i64: 128, 32>}, {pipeline_mode = #tpu.pipeline_mode<synchronous>, transform_indices = @transform_13, window_bounds = array<i64: 32, 128>}, {pipeline_mode = #tpu.pipeline_mode<synchronous>, transform_indices = @transform_14, window_bounds = array<i64: 32, 128>}, {pipeline_mode = #tpu.pipeline_mode<synchronous>, transform_indices = @transform_15, window_bounds = array<i64: 1, 128>}, {transform_indices = @transform_16, window_bounds = array<i64: 2, 128>}]} {
    %c0 = arith.constant 0 : index
    %c0_0 = arith.constant 0 : index
    %0 = vector.load %arg2[%c0, %c0_0] : memref<4x4xf32, #tpu.memory_space<vmem>>, vector<4x4xf32>
    %c0_1 = arith.constant 0 : index
    %c0_2 = arith.constant 0 : index
    %1 = vector.load %arg3[%c0_1, %c0_2] : memref<4x4xf32, #tpu.memory_space<vmem>>, vector<4x4xf32>
    %c0_3 = arith.constant 0 : index
    %c0_4 = arith.constant 0 : index
    %2 = vector.load %arg4[%c0_3, %c0_4] : memref<4x4xf32, #tpu.memory_space<vmem>>, vector<4x4xf32>
    %c0_5 = arith.constant 0 : index
    %c0_6 = arith.constant 0 : index
    %3 = vector.load %arg5[%c0_5, %c0_6] : memref<1x4xf32, #tpu.memory_space<vmem>>, vector<1x4xf32>
    %c0_7 = arith.constant 0 : index
    %c0_8 = arith.constant 0 : index
    %4 = vector.load %arg6[%c0_7, %c0_8] : memref<4x160xbf16, #tpu.memory_space<vmem>>, vector<4x160xbf16>
    %c0_9 = arith.constant 0 : index
    %c0_10 = arith.constant 0 : index
    %5 = vector.load %arg7[%c0_9, %c0_10] : memref<32x160xbf16, #tpu.memory_space<vmem>>, vector<32x160xbf16>
    %c0_11 = arith.constant 0 : index
    %c0_12 = arith.constant 0 : index
    %6 = vector.load %arg8[%c0_11, %c0_12] : memref<128x128xbf16, #tpu.memory_space<vmem>>, vector<128x128xbf16>
    %c0_13 = arith.constant 0 : index
    %c0_14 = arith.constant 0 : index
    %7 = vector.load %arg9[%c0_13, %c0_14] : memref<128x32xbf16, #tpu.memory_space<vmem>>, vector<128x32xbf16>
    %c0_15 = arith.constant 0 : index
    %c0_16 = arith.constant 0 : index
    %8 = vector.load %arg10[%c0_15, %c0_16] : memref<32x160xbf16, #tpu.memory_space<vmem>>, vector<32x160xbf16>
    %c0_17 = arith.constant 0 : index
    %c0_18 = arith.constant 0 : index
    %9 = vector.load %arg11[%c0_17, %c0_18] : memref<32x160xbf16, #tpu.memory_space<vmem>>, vector<32x160xbf16>
    %c0_19 = arith.constant 0 : index
    %c0_20 = arith.constant 0 : index
    %10 = vector.load %arg12[%c0_19, %c0_20] : memref<128x128xbf16, #tpu.memory_space<vmem>>, vector<128x128xbf16>
    %c0_21 = arith.constant 0 : index
    %c0_22 = arith.constant 0 : index
    %11 = vector.load %arg13[%c0_21, %c0_22] : memref<128x32xbf16, #tpu.memory_space<vmem>>, vector<128x32xbf16>
    %c0_23 = arith.constant 0 : index
    %c0_24 = arith.constant 0 : index
    %12 = vector.load %arg14[%c0_23, %c0_24] : memref<32x128xbf16, #tpu.memory_space<vmem>>, vector<32x128xbf16>
    %c0_25 = arith.constant 0 : index
    %c0_26 = arith.constant 0 : index
    %13 = vector.load %arg15[%c0_25, %c0_26] : memref<32x128xbf16, #tpu.memory_space<vmem>>, vector<32x128xbf16>
    %c0_27 = arith.constant 0 : index
    %c0_28 = arith.constant 0 : index
    %14 = vector.load %arg16[%c0_27, %c0_28] : memref<1x128xf32, #tpu.memory_space<vmem>>, vector<1x128xf32>
    %cst = arith.constant 0.000000e+00 : f32
    %15 = vector.broadcast %cst : f32 to vector<2x4xf32>
    %c0_i32 = arith.constant 0 : i32
    %16 = arith.index_cast %c0_i32 : i32 to index
    %c0_29 = arith.constant 0 : index
    %c0_30 = arith.constant 0 : index
    %17 = vector.load %arg1[%16, %c0_29, %c0_30] : memref<8x2x4xf32, #tpu.memory_space<vmem>>, vector<1x2x4xf32>
    %18 = vector.shape_cast %17 : vector<1x2x4xf32> to vector<2x4xf32>
    %19 = arith.addf %15, %18 : vector<2x4xf32>
    %20 = arith.mulf %18, %18 : vector<2x4xf32>
    %21 = arith.addf %15, %20 : vector<2x4xf32>
    %c1_i32 = arith.constant 1 : i32
    %22 = arith.index_cast %c1_i32 : i32 to index
    %c0_31 = arith.constant 0 : index
    %c0_32 = arith.constant 0 : index
    %23 = vector.load %arg1[%22, %c0_31, %c0_32] : memref<8x2x4xf32, #tpu.memory_space<vmem>>, vector<1x2x4xf32>
    %24 = vector.shape_cast %23 : vector<1x2x4xf32> to vector<2x4xf32>
    %25 = arith.addf %19, %24 : vector<2x4xf32>
    %26 = arith.mulf %24, %24 : vector<2x4xf32>
    %27 = arith.addf %21, %26 : vector<2x4xf32>
    %c2_i32 = arith.constant 2 : i32
    %28 = arith.index_cast %c2_i32 : i32 to index
    %c0_33 = arith.constant 0 : index
    %c0_34 = arith.constant 0 : index
    %29 = vector.load %arg1[%28, %c0_33, %c0_34] : memref<8x2x4xf32, #tpu.memory_space<vmem>>, vector<1x2x4xf32>
    %30 = vector.shape_cast %29 : vector<1x2x4xf32> to vector<2x4xf32>
    %31 = arith.addf %25, %30 : vector<2x4xf32>
    %32 = arith.mulf %30, %30 : vector<2x4xf32>
    %33 = arith.addf %27, %32 : vector<2x4xf32>
    %c3_i32 = arith.constant 3 : i32
    %34 = arith.index_cast %c3_i32 : i32 to index
    %c0_35 = arith.constant 0 : index
    %c0_36 = arith.constant 0 : index
    %35 = vector.load %arg1[%34, %c0_35, %c0_36] : memref<8x2x4xf32, #tpu.memory_space<vmem>>, vector<1x2x4xf32>
    %36 = vector.shape_cast %35 : vector<1x2x4xf32> to vector<2x4xf32>
    %37 = arith.addf %31, %36 : vector<2x4xf32>
    %38 = arith.mulf %36, %36 : vector<2x4xf32>
    %39 = arith.addf %33, %38 : vector<2x4xf32>
    %c4_i32 = arith.constant 4 : i32
    %40 = arith.index_cast %c4_i32 : i32 to index
    %c0_37 = arith.constant 0 : index
    %c0_38 = arith.constant 0 : index
    %41 = vector.load %arg1[%40, %c0_37, %c0_38] : memref<8x2x4xf32, #tpu.memory_space<vmem>>, vector<1x2x4xf32>
    %42 = vector.shape_cast %41 : vector<1x2x4xf32> to vector<2x4xf32>
    %43 = arith.addf %37, %42 : vector<2x4xf32>
    %44 = arith.mulf %42, %42 : vector<2x4xf32>
    %45 = arith.addf %39, %44 : vector<2x4xf32>
    %c5_i32 = arith.constant 5 : i32
    %46 = arith.index_cast %c5_i32 : i32 to index
    %c0_39 = arith.constant 0 : index
    %c0_40 = arith.constant 0 : index
    %47 = vector.load %arg1[%46, %c0_39, %c0_40] : memref<8x2x4xf32, #tpu.memory_space<vmem>>, vector<1x2x4xf32>
    %48 = vector.shape_cast %47 : vector<1x2x4xf32> to vector<2x4xf32>
    %49 = arith.addf %43, %48 : vector<2x4xf32>
    %50 = arith.mulf %48, %48 : vector<2x4xf32>
    %51 = arith.addf %45, %50 : vector<2x4xf32>
    %c6_i32 = arith.constant 6 : i32
    %52 = arith.index_cast %c6_i32 : i32 to index
    %c0_41 = arith.constant 0 : index
    %c0_42 = arith.constant 0 : index
    %53 = vector.load %arg1[%52, %c0_41, %c0_42] : memref<8x2x4xf32, #tpu.memory_space<vmem>>, vector<1x2x4xf32>
    %54 = vector.shape_cast %53 : vector<1x2x4xf32> to vector<2x4xf32>
    %55 = arith.addf %49, %54 : vector<2x4xf32>
    %56 = arith.mulf %54, %54 : vector<2x4xf32>
    %57 = arith.addf %51, %56 : vector<2x4xf32>
    %c7_i32 = arith.constant 7 : i32
    %58 = arith.index_cast %c7_i32 : i32 to index
    %c0_43 = arith.constant 0 : index
    %c0_44 = arith.constant 0 : index
    %59 = vector.load %arg1[%58, %c0_43, %c0_44] : memref<8x2x4xf32, #tpu.memory_space<vmem>>, vector<1x2x4xf32>
    %60 = vector.shape_cast %59 : vector<1x2x4xf32> to vector<2x4xf32>
    %61 = arith.addf %55, %60 : vector<2x4xf32>
    %62 = arith.mulf %60, %60 : vector<2x4xf32>
    %63 = arith.addf %57, %62 : vector<2x4xf32>
    %c8_i32 = arith.constant 8 : i32
    %cst_45 = arith.constant 1.250000e-01 : f32
    %64 = vector.broadcast %cst_45 : f32 to vector<2x4xf32>
    %65 = arith.mulf %61, %64 : vector<2x4xf32>
    %cst_46 = arith.constant 1.250000e-01 : f32
    %66 = vector.broadcast %cst_46 : f32 to vector<2x4xf32>
    %67 = arith.mulf %63, %66 : vector<2x4xf32>
    %cst_47 = arith.constant dense<0.000000e+00> : vector<2x4xf32>
    %68 = tpu.matmul %65, %0, %cst_47 {dimension_numbers = #tpu.dot_dimension_numbers<[1], [0], [0], [1], [0, 0, 1, 1], [], []>} : vector<2x4xf32>, vector<4x4xf32>, vector<2x4xf32> -> vector<2x4xf32>
    %cst_48 = arith.constant 2.000000e+00 : f32
    %69 = vector.broadcast %cst_48 : f32 to vector<2x4xf32>
    %70 = arith.mulf %69, %68 : vector<2x4xf32>
    %71 = arith.mulf %70, %65 : vector<2x4xf32>
    %72 = arith.subf %67, %71 : vector<2x4xf32>
    %73 = arith.mulf %68, %68 : vector<2x4xf32>
    %74 = arith.addf %72, %73 : vector<2x4xf32>
    %cst_49 = arith.constant 0.000000e+00 : f32
    %75 = vector.broadcast %cst_49 : f32 to vector<2x4xf32>
    %76 = arith.maximumf %74, %75 : vector<2x4xf32>
    %cst_50 = arith.constant 9.99999993E-9 : f32
    %77 = vector.broadcast %cst_50 : f32 to vector<2x4xf32>
    %78 = arith.addf %76, %77 : vector<2x4xf32>
    %79 = math.sqrt %78 : vector<2x4xf32>
    %cst_51 = arith.constant dense<0.000000e+00> : vector<2x4xf32>
    %80 = tpu.matmul %79, %1, %cst_51 {dimension_numbers = #tpu.dot_dimension_numbers<[1], [0], [0], [1], [0, 0, 1, 1], [], []>} : vector<2x4xf32>, vector<4x4xf32>, vector<2x4xf32> -> vector<2x4xf32>
    %cst_52 = arith.constant 9.99999993E-9 : f32
    %81 = vector.broadcast %cst_52 : f32 to vector<2x4xf32>
    %82 = arith.cmpf ole, %80, %81 : vector<2x4xf32>
    %cst_53 = arith.constant 1.000000e+00 : f32
    %83 = vector.broadcast %cst_53 : f32 to vector<2x4xf32>
    %84 = arith.select %82, %83, %80 : vector<2x4xi1>, vector<2x4xf32>
    %85 = tpu.reciprocal %84 {approx = true} : vector<2x4xf32> -> vector<2x4xf32>
    %86 = arith.subf %65, %68 : vector<2x4xf32>
    %87 = arith.mulf %86, %85 : vector<2x4xf32>
    %cst_54 = arith.constant dense<0.000000e+00> : vector<2x4xf32>
    %88 = tpu.matmul %87, %2, %cst_54 {dimension_numbers = #tpu.dot_dimension_numbers<[1], [0], [0], [1], [0, 0, 1, 1], [], []>} : vector<2x4xf32>, vector<4x4xf32>, vector<2x4xf32> -> vector<2x4xf32>
    %89 = vector.broadcast %3 : vector<1x4xf32> to vector<2x4xf32>
    %90 = arith.addf %88, %89 : vector<2x4xf32>
    %91 = arith.negf %90 : vector<2x4xf32>
    %92 = math.exp %91 : vector<2x4xf32>
    %cst_55 = arith.constant 1.000000e+00 : f32
    %93 = vector.broadcast %cst_55 : f32 to vector<2x4xf32>
    %94 = arith.addf %93, %92 : vector<2x4xf32>
    %95 = arith.divf %93, %94 : vector<2x4xf32>
    %96 = arith.mulf %95, %85 : vector<2x4xf32>
    %cst_56 = arith.constant 0.000000e+00 : f32
    %97 = vector.broadcast %cst_56 : f32 to vector<2x4xf32>
    %98 = arith.subf %97, %68 : vector<2x4xf32>
    %99 = arith.mulf %98, %96 : vector<2x4xf32>
    %cst_57 = arith.constant 0.000000e+00 : f32
    %100 = vector.broadcast %cst_57 : f32 to vector<2x32xf32>
    %cst_58 = arith.constant 0.000000e+00 : f32
    %101 = vector.broadcast %cst_58 : f32 to vector<2x32xf32>
    %cst_59 = arith.constant 0.000000e+00 : f32
    %102 = vector.broadcast %cst_59 : f32 to vector<2x128xf32>
    %cst_60 = arith.constant 0.000000e+00 : f32
    %103 = vector.broadcast %cst_60 : f32 to vector<2x128xf32>
    %c0_i32_61 = arith.constant 0 : i32
    %104 = arith.index_cast %c0_i32_61 : i32 to index
    %c0_62 = arith.constant 0 : index
    %c0_63 = arith.constant 0 : index
    %105 = vector.load %arg1[%104, %c0_62, %c0_63] : memref<8x2x4xf32, #tpu.memory_space<vmem>>, vector<1x2x4xf32>
    %106 = vector.shape_cast %105 : vector<1x2x4xf32> to vector<2x4xf32>
    %107 = arith.mulf %106, %96 : vector<2x4xf32>
    %108 = arith.addf %107, %99 : vector<2x4xf32>
    %109 = arith.truncf %108 : vector<2x4xf32> to vector<2x4xbf16>
    %cst_64 = arith.constant dense<0.000000e+00> : vector<2x160xf32>
    %110 = tpu.matmul %109, %4, %cst_64 {dimension_numbers = #tpu.dot_dimension_numbers<[1], [0], [0], [1], [0, 0, 1, 1], [], []>} : vector<2x4xbf16>, vector<4x160xbf16>, vector<2x160xf32> -> vector<2x160xf32>
    %111 = arith.truncf %100 : vector<2x32xf32> to vector<2x32xbf16>
    %cst_65 = arith.constant dense<0.000000e+00> : vector<2x160xf32>
    %112 = tpu.matmul %111, %5, %cst_65 {dimension_numbers = #tpu.dot_dimension_numbers<[1], [0], [0], [1], [0, 0, 1, 1], [], []>} : vector<2x32xbf16>, vector<32x160xbf16>, vector<2x160xf32> -> vector<2x160xf32>
    %113 = arith.addf %110, %112 : vector<2x160xf32>
    %114 = vector.extract_strided_slice %113 {offsets = [0, 0], sizes = [2, 128], strides = [1, 1]} : vector<2x160xf32> to vector<2x128xf32>
    %115 = arith.truncf %102 : vector<2x128xf32> to vector<2x128xbf16>
    %cst_66 = arith.constant dense<0.000000e+00> : vector<2x128xf32>
    %116 = tpu.matmul %115, %6, %cst_66 {dimension_numbers = #tpu.dot_dimension_numbers<[1], [0], [0], [1], [0, 0, 1, 1], [], []>} : vector<2x128xbf16>, vector<128x128xbf16>, vector<2x128xf32> -> vector<2x128xf32>
    %117 = arith.addf %114, %116 : vector<2x128xf32>
    %118 = vector.extract_strided_slice %113 {offsets = [0, 128], sizes = [2, 32], strides = [1, 1]} : vector<2x160xf32> to vector<2x32xf32>
    %119 = arith.truncf %117 : vector<2x128xf32> to vector<2x128xbf16>
    %cst_67 = arith.constant dense<0.000000e+00> : vector<2x32xf32>
    %120 = tpu.matmul %119, %7, %cst_67 {dimension_numbers = #tpu.dot_dimension_numbers<[1], [0], [0], [1], [0, 0, 1, 1], [], []>} : vector<2x128xbf16>, vector<128x32xbf16>, vector<2x32xf32> -> vector<2x32xf32>
    %121 = arith.addf %118, %120 : vector<2x32xf32>
    %122 = math.tanh %121 : vector<2x32xf32>
    %123 = arith.truncf %122 : vector<2x32xf32> to vector<2x32xbf16>
    %cst_68 = arith.constant dense<0.000000e+00> : vector<2x160xf32>
    %124 = tpu.matmul %123, %8, %cst_68 {dimension_numbers = #tpu.dot_dimension_numbers<[1], [0], [0], [1], [0, 0, 1, 1], [], []>} : vector<2x32xbf16>, vector<32x160xbf16>, vector<2x160xf32> -> vector<2x160xf32>
    %125 = arith.truncf %101 : vector<2x32xf32> to vector<2x32xbf16>
    %cst_69 = arith.constant dense<0.000000e+00> : vector<2x160xf32>
    %126 = tpu.matmul %125, %9, %cst_69 {dimension_numbers = #tpu.dot_dimension_numbers<[1], [0], [0], [1], [0, 0, 1, 1], [], []>} : vector<2x32xbf16>, vector<32x160xbf16>, vector<2x160xf32> -> vector<2x160xf32>
    %127 = arith.addf %124, %126 : vector<2x160xf32>
    %128 = vector.extract_strided_slice %127 {offsets = [0, 0], sizes = [2, 128], strides = [1, 1]} : vector<2x160xf32> to vector<2x128xf32>
    %129 = arith.truncf %103 : vector<2x128xf32> to vector<2x128xbf16>
    %cst_70 = arith.constant dense<0.000000e+00> : vector<2x128xf32>
    %130 = tpu.matmul %129, %10, %cst_70 {dimension_numbers = #tpu.dot_dimension_numbers<[1], [0], [0], [1], [0, 0, 1, 1], [], []>} : vector<2x128xbf16>, vector<128x128xbf16>, vector<2x128xf32> -> vector<2x128xf32>
    %131 = arith.addf %128, %130 : vector<2x128xf32>
    %132 = vector.extract_strided_slice %127 {offsets = [0, 128], sizes = [2, 32], strides = [1, 1]} : vector<2x160xf32> to vector<2x32xf32>
    %133 = arith.truncf %131 : vector<2x128xf32> to vector<2x128xbf16>
    %cst_71 = arith.constant dense<0.000000e+00> : vector<2x32xf32>
    %134 = tpu.matmul %133, %11, %cst_71 {dimension_numbers = #tpu.dot_dimension_numbers<[1], [0], [0], [1], [0, 0, 1, 1], [], []>} : vector<2x128xbf16>, vector<128x32xbf16>, vector<2x32xf32> -> vector<2x32xf32>
    %135 = arith.addf %132, %134 : vector<2x32xf32>
    %136 = math.tanh %135 : vector<2x32xf32>
    %c1_i32_72 = arith.constant 1 : i32
    %137 = arith.index_cast %c1_i32_72 : i32 to index
    %c0_73 = arith.constant 0 : index
    %c0_74 = arith.constant 0 : index
    %138 = vector.load %arg1[%137, %c0_73, %c0_74] : memref<8x2x4xf32, #tpu.memory_space<vmem>>, vector<1x2x4xf32>
    %139 = vector.shape_cast %138 : vector<1x2x4xf32> to vector<2x4xf32>
    %140 = arith.mulf %139, %96 : vector<2x4xf32>
    %141 = arith.addf %140, %99 : vector<2x4xf32>
    %142 = arith.truncf %141 : vector<2x4xf32> to vector<2x4xbf16>
    %cst_75 = arith.constant dense<0.000000e+00> : vector<2x160xf32>
    %143 = tpu.matmul %142, %4, %cst_75 {dimension_numbers = #tpu.dot_dimension_numbers<[1], [0], [0], [1], [0, 0, 1, 1], [], []>} : vector<2x4xbf16>, vector<4x160xbf16>, vector<2x160xf32> -> vector<2x160xf32>
    %144 = arith.truncf %122 : vector<2x32xf32> to vector<2x32xbf16>
    %cst_76 = arith.constant dense<0.000000e+00> : vector<2x160xf32>
    %145 = tpu.matmul %144, %5, %cst_76 {dimension_numbers = #tpu.dot_dimension_numbers<[1], [0], [0], [1], [0, 0, 1, 1], [], []>} : vector<2x32xbf16>, vector<32x160xbf16>, vector<2x160xf32> -> vector<2x160xf32>
    %146 = arith.addf %143, %145 : vector<2x160xf32>
    %147 = vector.extract_strided_slice %146 {offsets = [0, 0], sizes = [2, 128], strides = [1, 1]} : vector<2x160xf32> to vector<2x128xf32>
    %148 = arith.truncf %117 : vector<2x128xf32> to vector<2x128xbf16>
    %cst_77 = arith.constant dense<0.000000e+00> : vector<2x128xf32>
    %149 = tpu.matmul %148, %6, %cst_77 {dimension_numbers = #tpu.dot_dimension_numbers<[1], [0], [0], [1], [0, 0, 1, 1], [], []>} : vector<2x128xbf16>, vector<128x128xbf16>, vector<2x128xf32> -> vector<2x128xf32>
    %150 = arith.addf %147, %149 : vector<2x128xf32>
    %151 = vector.extract_strided_slice %146 {offsets = [0, 128], sizes = [2, 32], strides = [1, 1]} : vector<2x160xf32> to vector<2x32xf32>
    %152 = arith.truncf %150 : vector<2x128xf32> to vector<2x128xbf16>
    %cst_78 = arith.constant dense<0.000000e+00> : vector<2x32xf32>
    %153 = tpu.matmul %152, %7, %cst_78 {dimension_numbers = #tpu.dot_dimension_numbers<[1], [0], [0], [1], [0, 0, 1, 1], [], []>} : vector<2x128xbf16>, vector<128x32xbf16>, vector<2x32xf32> -> vector<2x32xf32>
    %154 = arith.addf %151, %153 : vector<2x32xf32>
    %155 = math.tanh %154 : vector<2x32xf32>
    %156 = arith.truncf %155 : vector<2x32xf32> to vector<2x32xbf16>
    %cst_79 = arith.constant dense<0.000000e+00> : vector<2x160xf32>
    %157 = tpu.matmul %156, %8, %cst_79 {dimension_numbers = #tpu.dot_dimension_numbers<[1], [0], [0], [1], [0, 0, 1, 1], [], []>} : vector<2x32xbf16>, vector<32x160xbf16>, vector<2x160xf32> -> vector<2x160xf32>
    %158 = arith.truncf %136 : vector<2x32xf32> to vector<2x32xbf16>
    %cst_80 = arith.constant dense<0.000000e+00> : vector<2x160xf32>
    %159 = tpu.matmul %158, %9, %cst_80 {dimension_numbers = #tpu.dot_dimension_numbers<[1], [0], [0], [1], [0, 0, 1, 1], [], []>} : vector<2x32xbf16>, vector<32x160xbf16>, vector<2x160xf32> -> vector<2x160xf32>
    %160 = arith.addf %157, %159 : vector<2x160xf32>
    %161 = vector.extract_strided_slice %160 {offsets = [0, 0], sizes = [2, 128], strides = [1, 1]} : vector<2x160xf32> to vector<2x128xf32>
    %162 = arith.truncf %131 : vector<2x128xf32> to vector<2x128xbf16>
    %cst_81 = arith.constant dense<0.000000e+00> : vector<2x128xf32>
    %163 = tpu.matmul %162, %10, %cst_81 {dimension_numbers = #tpu.dot_dimension_numbers<[1], [0], [0], [1], [0, 0, 1, 1], [], []>} : vector<2x128xbf16>, vector<128x128xbf16>, vector<2x128xf32> -> vector<2x128xf32>
    %164 = arith.addf %161, %163 : vector<2x128xf32>
    %165 = vector.extract_strided_slice %160 {offsets = [0, 128], sizes = [2, 32], strides = [1, 1]} : vector<2x160xf32> to vector<2x32xf32>
    %166 = arith.truncf %164 : vector<2x128xf32> to vector<2x128xbf16>
    %cst_82 = arith.constant dense<0.000000e+00> : vector<2x32xf32>
    %167 = tpu.matmul %166, %11, %cst_82 {dimension_numbers = #tpu.dot_dimension_numbers<[1], [0], [0], [1], [0, 0, 1, 1], [], []>} : vector<2x128xbf16>, vector<128x32xbf16>, vector<2x32xf32> -> vector<2x32xf32>
    %168 = arith.addf %165, %167 : vector<2x32xf32>
    %169 = math.tanh %168 : vector<2x32xf32>
    %c2_i32_83 = arith.constant 2 : i32
    %170 = arith.index_cast %c2_i32_83 : i32 to index
    %c0_84 = arith.constant 0 : index
    %c0_85 = arith.constant 0 : index
    %171 = vector.load %arg1[%170, %c0_84, %c0_85] : memref<8x2x4xf32, #tpu.memory_space<vmem>>, vector<1x2x4xf32>
    %172 = vector.shape_cast %171 : vector<1x2x4xf32> to vector<2x4xf32>
    %173 = arith.mulf %172, %96 : vector<2x4xf32>
    %174 = arith.addf %173, %99 : vector<2x4xf32>
    %175 = arith.truncf %174 : vector<2x4xf32> to vector<2x4xbf16>
    %cst_86 = arith.constant dense<0.000000e+00> : vector<2x160xf32>
    %176 = tpu.matmul %175, %4, %cst_86 {dimension_numbers = #tpu.dot_dimension_numbers<[1], [0], [0], [1], [0, 0, 1, 1], [], []>} : vector<2x4xbf16>, vector<4x160xbf16>, vector<2x160xf32> -> vector<2x160xf32>
    %177 = arith.truncf %155 : vector<2x32xf32> to vector<2x32xbf16>
    %cst_87 = arith.constant dense<0.000000e+00> : vector<2x160xf32>
    %178 = tpu.matmul %177, %5, %cst_87 {dimension_numbers = #tpu.dot_dimension_numbers<[1], [0], [0], [1], [0, 0, 1, 1], [], []>} : vector<2x32xbf16>, vector<32x160xbf16>, vector<2x160xf32> -> vector<2x160xf32>
    %179 = arith.addf %176, %178 : vector<2x160xf32>
    %180 = vector.extract_strided_slice %179 {offsets = [0, 0], sizes = [2, 128], strides = [1, 1]} : vector<2x160xf32> to vector<2x128xf32>
    %181 = arith.truncf %150 : vector<2x128xf32> to vector<2x128xbf16>
    %cst_88 = arith.constant dense<0.000000e+00> : vector<2x128xf32>
    %182 = tpu.matmul %181, %6, %cst_88 {dimension_numbers = #tpu.dot_dimension_numbers<[1], [0], [0], [1], [0, 0, 1, 1], [], []>} : vector<2x128xbf16>, vector<128x128xbf16>, vector<2x128xf32> -> vector<2x128xf32>
    %183 = arith.addf %180, %182 : vector<2x128xf32>
    %184 = vector.extract_strided_slice %179 {offsets = [0, 128], sizes = [2, 32], strides = [1, 1]} : vector<2x160xf32> to vector<2x32xf32>
    %185 = arith.truncf %183 : vector<2x128xf32> to vector<2x128xbf16>
    %cst_89 = arith.constant dense<0.000000e+00> : vector<2x32xf32>
    %186 = tpu.matmul %185, %7, %cst_89 {dimension_numbers = #tpu.dot_dimension_numbers<[1], [0], [0], [1], [0, 0, 1, 1], [], []>} : vector<2x128xbf16>, vector<128x32xbf16>, vector<2x32xf32> -> vector<2x32xf32>
    %187 = arith.addf %184, %186 : vector<2x32xf32>
    %188 = math.tanh %187 : vector<2x32xf32>
    %189 = arith.truncf %188 : vector<2x32xf32> to vector<2x32xbf16>
    %cst_90 = arith.constant dense<0.000000e+00> : vector<2x160xf32>
    %190 = tpu.matmul %189, %8, %cst_90 {dimension_numbers = #tpu.dot_dimension_numbers<[1], [0], [0], [1], [0, 0, 1, 1], [], []>} : vector<2x32xbf16>, vector<32x160xbf16>, vector<2x160xf32> -> vector<2x160xf32>
    %191 = arith.truncf %169 : vector<2x32xf32> to vector<2x32xbf16>
    %cst_91 = arith.constant dense<0.000000e+00> : vector<2x160xf32>
    %192 = tpu.matmul %191, %9, %cst_91 {dimension_numbers = #tpu.dot_dimension_numbers<[1], [0], [0], [1], [0, 0, 1, 1], [], []>} : vector<2x32xbf16>, vector<32x160xbf16>, vector<2x160xf32> -> vector<2x160xf32>
    %193 = arith.addf %190, %192 : vector<2x160xf32>
    %194 = vector.extract_strided_slice %193 {offsets = [0, 0], sizes = [2, 128], strides = [1, 1]} : vector<2x160xf32> to vector<2x128xf32>
    %195 = arith.truncf %164 : vector<2x128xf32> to vector<2x128xbf16>
    %cst_92 = arith.constant dense<0.000000e+00> : vector<2x128xf32>
    %196 = tpu.matmul %195, %10, %cst_92 {dimension_numbers = #tpu.dot_dimension_numbers<[1], [0], [0], [1], [0, 0, 1, 1], [], []>} : vector<2x128xbf16>, vector<128x128xbf16>, vector<2x128xf32> -> vector<2x128xf32>
    %197 = arith.addf %194, %196 : vector<2x128xf32>
    %198 = vector.extract_strided_slice %193 {offsets = [0, 128], sizes = [2, 32], strides = [1, 1]} : vector<2x160xf32> to vector<2x32xf32>
    %199 = arith.truncf %197 : vector<2x128xf32> to vector<2x128xbf16>
    %cst_93 = arith.constant dense<0.000000e+00> : vector<2x32xf32>
    %200 = tpu.matmul %199, %11, %cst_93 {dimension_numbers = #tpu.dot_dimension_numbers<[1], [0], [0], [1], [0, 0, 1, 1], [], []>} : vector<2x128xbf16>, vector<128x32xbf16>, vector<2x32xf32> -> vector<2x32xf32>
    %201 = arith.addf %198, %200 : vector<2x32xf32>
    %202 = math.tanh %201 : vector<2x32xf32>
    %c3_i32_94 = arith.constant 3 : i32
    %203 = arith.index_cast %c3_i32_94 : i32 to index
    %c0_95 = arith.constant 0 : index
    %c0_96 = arith.constant 0 : index
    %204 = vector.load %arg1[%203, %c0_95, %c0_96] : memref<8x2x4xf32, #tpu.memory_space<vmem>>, vector<1x2x4xf32>
    %205 = vector.shape_cast %204 : vector<1x2x4xf32> to vector<2x4xf32>
    %206 = arith.mulf %205, %96 : vector<2x4xf32>
    %207 = arith.addf %206, %99 : vector<2x4xf32>
    %208 = arith.truncf %207 : vector<2x4xf32> to vector<2x4xbf16>
    %cst_97 = arith.constant dense<0.000000e+00> : vector<2x160xf32>
    %209 = tpu.matmul %208, %4, %cst_97 {dimension_numbers = #tpu.dot_dimension_numbers<[1], [0], [0], [1], [0, 0, 1, 1], [], []>} : vector<2x4xbf16>, vector<4x160xbf16>, vector<2x160xf32> -> vector<2x160xf32>
    %210 = arith.truncf %188 : vector<2x32xf32> to vector<2x32xbf16>
    %cst_98 = arith.constant dense<0.000000e+00> : vector<2x160xf32>
    %211 = tpu.matmul %210, %5, %cst_98 {dimension_numbers = #tpu.dot_dimension_numbers<[1], [0], [0], [1], [0, 0, 1, 1], [], []>} : vector<2x32xbf16>, vector<32x160xbf16>, vector<2x160xf32> -> vector<2x160xf32>
    %212 = arith.addf %209, %211 : vector<2x160xf32>
    %213 = vector.extract_strided_slice %212 {offsets = [0, 0], sizes = [2, 128], strides = [1, 1]} : vector<2x160xf32> to vector<2x128xf32>
    %214 = arith.truncf %183 : vector<2x128xf32> to vector<2x128xbf16>
    %cst_99 = arith.constant dense<0.000000e+00> : vector<2x128xf32>
    %215 = tpu.matmul %214, %6, %cst_99 {dimension_numbers = #tpu.dot_dimension_numbers<[1], [0], [0], [1], [0, 0, 1, 1], [], []>} : vector<2x128xbf16>, vector<128x128xbf16>, vector<2x128xf32> -> vector<2x128xf32>
    %216 = arith.addf %213, %215 : vector<2x128xf32>
    %217 = vector.extract_strided_slice %212 {offsets = [0, 128], sizes = [2, 32], strides = [1, 1]} : vector<2x160xf32> to vector<2x32xf32>
    %218 = arith.truncf %216 : vector<2x128xf32> to vector<2x128xbf16>
    %cst_100 = arith.constant dense<0.000000e+00> : vector<2x32xf32>
    %219 = tpu.matmul %218, %7, %cst_100 {dimension_numbers = #tpu.dot_dimension_numbers<[1], [0], [0], [1], [0, 0, 1, 1], [], []>} : vector<2x128xbf16>, vector<128x32xbf16>, vector<2x32xf32> -> vector<2x32xf32>
    %220 = arith.addf %217, %219 : vector<2x32xf32>
    %221 = math.tanh %220 : vector<2x32xf32>
    %222 = arith.truncf %221 : vector<2x32xf32> to vector<2x32xbf16>
    %cst_101 = arith.constant dense<0.000000e+00> : vector<2x160xf32>
    %223 = tpu.matmul %222, %8, %cst_101 {dimension_numbers = #tpu.dot_dimension_numbers<[1], [0], [0], [1], [0, 0, 1, 1], [], []>} : vector<2x32xbf16>, vector<32x160xbf16>, vector<2x160xf32> -> vector<2x160xf32>
    %224 = arith.truncf %202 : vector<2x32xf32> to vector<2x32xbf16>
    %cst_102 = arith.constant dense<0.000000e+00> : vector<2x160xf32>
    %225 = tpu.matmul %224, %9, %cst_102 {dimension_numbers = #tpu.dot_dimension_numbers<[1], [0], [0], [1], [0, 0, 1, 1], [], []>} : vector<2x32xbf16>, vector<32x160xbf16>, vector<2x160xf32> -> vector<2x160xf32>
    %226 = arith.addf %223, %225 : vector<2x160xf32>
    %227 = vector.extract_strided_slice %226 {offsets = [0, 0], sizes = [2, 128], strides = [1, 1]} : vector<2x160xf32> to vector<2x128xf32>
    %228 = arith.truncf %197 : vector<2x128xf32> to vector<2x128xbf16>
    %cst_103 = arith.constant dense<0.000000e+00> : vector<2x128xf32>
    %229 = tpu.matmul %228, %10, %cst_103 {dimension_numbers = #tpu.dot_dimension_numbers<[1], [0], [0], [1], [0, 0, 1, 1], [], []>} : vector<2x128xbf16>, vector<128x128xbf16>, vector<2x128xf32> -> vector<2x128xf32>
    %230 = arith.addf %227, %229 : vector<2x128xf32>
    %231 = vector.extract_strided_slice %226 {offsets = [0, 128], sizes = [2, 32], strides = [1, 1]} : vector<2x160xf32> to vector<2x32xf32>
    %232 = arith.truncf %230 : vector<2x128xf32> to vector<2x128xbf16>
    %cst_104 = arith.constant dense<0.000000e+00> : vector<2x32xf32>
    %233 = tpu.matmul %232, %11, %cst_104 {dimension_numbers = #tpu.dot_dimension_numbers<[1], [0], [0], [1], [0, 0, 1, 1], [], []>} : vector<2x128xbf16>, vector<128x32xbf16>, vector<2x32xf32> -> vector<2x32xf32>
    %234 = arith.addf %231, %233 : vector<2x32xf32>
    %235 = math.tanh %234 : vector<2x32xf32>
    %c4_i32_105 = arith.constant 4 : i32
    %236 = arith.index_cast %c4_i32_105 : i32 to index
    %c0_106 = arith.constant 0 : index
    %c0_107 = arith.constant 0 : index
    %237 = vector.load %arg1[%236, %c0_106, %c0_107] : memref<8x2x4xf32, #tpu.memory_space<vmem>>, vector<1x2x4xf32>
    %238 = vector.shape_cast %237 : vector<1x2x4xf32> to vector<2x4xf32>
    %239 = arith.mulf %238, %96 : vector<2x4xf32>
    %240 = arith.addf %239, %99 : vector<2x4xf32>
    %241 = arith.truncf %240 : vector<2x4xf32> to vector<2x4xbf16>
    %cst_108 = arith.constant dense<0.000000e+00> : vector<2x160xf32>
    %242 = tpu.matmul %241, %4, %cst_108 {dimension_numbers = #tpu.dot_dimension_numbers<[1], [0], [0], [1], [0, 0, 1, 1], [], []>} : vector<2x4xbf16>, vector<4x160xbf16>, vector<2x160xf32> -> vector<2x160xf32>
    %243 = arith.truncf %221 : vector<2x32xf32> to vector<2x32xbf16>
    %cst_109 = arith.constant dense<0.000000e+00> : vector<2x160xf32>
    %244 = tpu.matmul %243, %5, %cst_109 {dimension_numbers = #tpu.dot_dimension_numbers<[1], [0], [0], [1], [0, 0, 1, 1], [], []>} : vector<2x32xbf16>, vector<32x160xbf16>, vector<2x160xf32> -> vector<2x160xf32>
    %245 = arith.addf %242, %244 : vector<2x160xf32>
    %246 = vector.extract_strided_slice %245 {offsets = [0, 0], sizes = [2, 128], strides = [1, 1]} : vector<2x160xf32> to vector<2x128xf32>
    %247 = arith.truncf %216 : vector<2x128xf32> to vector<2x128xbf16>
    %cst_110 = arith.constant dense<0.000000e+00> : vector<2x128xf32>
    %248 = tpu.matmul %247, %6, %cst_110 {dimension_numbers = #tpu.dot_dimension_numbers<[1], [0], [0], [1], [0, 0, 1, 1], [], []>} : vector<2x128xbf16>, vector<128x128xbf16>, vector<2x128xf32> -> vector<2x128xf32>
    %249 = arith.addf %246, %248 : vector<2x128xf32>
    %250 = vector.extract_strided_slice %245 {offsets = [0, 128], sizes = [2, 32], strides = [1, 1]} : vector<2x160xf32> to vector<2x32xf32>
    %251 = arith.truncf %249 : vector<2x128xf32> to vector<2x128xbf16>
    %cst_111 = arith.constant dense<0.000000e+00> : vector<2x32xf32>
    %252 = tpu.matmul %251, %7, %cst_111 {dimension_numbers = #tpu.dot_dimension_numbers<[1], [0], [0], [1], [0, 0, 1, 1], [], []>} : vector<2x128xbf16>, vector<128x32xbf16>, vector<2x32xf32> -> vector<2x32xf32>
    %253 = arith.addf %250, %252 : vector<2x32xf32>
    %254 = math.tanh %253 : vector<2x32xf32>
    %255 = arith.truncf %254 : vector<2x32xf32> to vector<2x32xbf16>
    %cst_112 = arith.constant dense<0.000000e+00> : vector<2x160xf32>
    %256 = tpu.matmul %255, %8, %cst_112 {dimension_numbers = #tpu.dot_dimension_numbers<[1], [0], [0], [1], [0, 0, 1, 1], [], []>} : vector<2x32xbf16>, vector<32x160xbf16>, vector<2x160xf32> -> vector<2x160xf32>
    %257 = arith.truncf %235 : vector<2x32xf32> to vector<2x32xbf16>
    %cst_113 = arith.constant dense<0.000000e+00> : vector<2x160xf32>
    %258 = tpu.matmul %257, %9, %cst_113 {dimension_numbers = #tpu.dot_dimension_numbers<[1], [0], [0], [1], [0, 0, 1, 1], [], []>} : vector<2x32xbf16>, vector<32x160xbf16>, vector<2x160xf32> -> vector<2x160xf32>
    %259 = arith.addf %256, %258 : vector<2x160xf32>
    %260 = vector.extract_strided_slice %259 {offsets = [0, 0], sizes = [2, 128], strides = [1, 1]} : vector<2x160xf32> to vector<2x128xf32>
    %261 = arith.truncf %230 : vector<2x128xf32> to vector<2x128xbf16>
    %cst_114 = arith.constant dense<0.000000e+00> : vector<2x128xf32>
    %262 = tpu.matmul %261, %10, %cst_114 {dimension_numbers = #tpu.dot_dimension_numbers<[1], [0], [0], [1], [0, 0, 1, 1], [], []>} : vector<2x128xbf16>, vector<128x128xbf16>, vector<2x128xf32> -> vector<2x128xf32>
    %263 = arith.addf %260, %262 : vector<2x128xf32>
    %264 = vector.extract_strided_slice %259 {offsets = [0, 128], sizes = [2, 32], strides = [1, 1]} : vector<2x160xf32> to vector<2x32xf32>
    %265 = arith.truncf %263 : vector<2x128xf32> to vector<2x128xbf16>
    %cst_115 = arith.constant dense<0.000000e+00> : vector<2x32xf32>
    %266 = tpu.matmul %265, %11, %cst_115 {dimension_numbers = #tpu.dot_dimension_numbers<[1], [0], [0], [1], [0, 0, 1, 1], [], []>} : vector<2x128xbf16>, vector<128x32xbf16>, vector<2x32xf32> -> vector<2x32xf32>
    %267 = arith.addf %264, %266 : vector<2x32xf32>
    %268 = math.tanh %267 : vector<2x32xf32>
    %c5_i32_116 = arith.constant 5 : i32
    %269 = arith.index_cast %c5_i32_116 : i32 to index
    %c0_117 = arith.constant 0 : index
    %c0_118 = arith.constant 0 : index
    %270 = vector.load %arg1[%269, %c0_117, %c0_118] : memref<8x2x4xf32, #tpu.memory_space<vmem>>, vector<1x2x4xf32>
    %271 = vector.shape_cast %270 : vector<1x2x4xf32> to vector<2x4xf32>
    %272 = arith.mulf %271, %96 : vector<2x4xf32>
    %273 = arith.addf %272, %99 : vector<2x4xf32>
    %274 = arith.truncf %273 : vector<2x4xf32> to vector<2x4xbf16>
    %cst_119 = arith.constant dense<0.000000e+00> : vector<2x160xf32>
    %275 = tpu.matmul %274, %4, %cst_119 {dimension_numbers = #tpu.dot_dimension_numbers<[1], [0], [0], [1], [0, 0, 1, 1], [], []>} : vector<2x4xbf16>, vector<4x160xbf16>, vector<2x160xf32> -> vector<2x160xf32>
    %276 = arith.truncf %254 : vector<2x32xf32> to vector<2x32xbf16>
    %cst_120 = arith.constant dense<0.000000e+00> : vector<2x160xf32>
    %277 = tpu.matmul %276, %5, %cst_120 {dimension_numbers = #tpu.dot_dimension_numbers<[1], [0], [0], [1], [0, 0, 1, 1], [], []>} : vector<2x32xbf16>, vector<32x160xbf16>, vector<2x160xf32> -> vector<2x160xf32>
    %278 = arith.addf %275, %277 : vector<2x160xf32>
    %279 = vector.extract_strided_slice %278 {offsets = [0, 0], sizes = [2, 128], strides = [1, 1]} : vector<2x160xf32> to vector<2x128xf32>
    %280 = arith.truncf %249 : vector<2x128xf32> to vector<2x128xbf16>
    %cst_121 = arith.constant dense<0.000000e+00> : vector<2x128xf32>
    %281 = tpu.matmul %280, %6, %cst_121 {dimension_numbers = #tpu.dot_dimension_numbers<[1], [0], [0], [1], [0, 0, 1, 1], [], []>} : vector<2x128xbf16>, vector<128x128xbf16>, vector<2x128xf32> -> vector<2x128xf32>
    %282 = arith.addf %279, %281 : vector<2x128xf32>
    %283 = vector.extract_strided_slice %278 {offsets = [0, 128], sizes = [2, 32], strides = [1, 1]} : vector<2x160xf32> to vector<2x32xf32>
    %284 = arith.truncf %282 : vector<2x128xf32> to vector<2x128xbf16>
    %cst_122 = arith.constant dense<0.000000e+00> : vector<2x32xf32>
    %285 = tpu.matmul %284, %7, %cst_122 {dimension_numbers = #tpu.dot_dimension_numbers<[1], [0], [0], [1], [0, 0, 1, 1], [], []>} : vector<2x128xbf16>, vector<128x32xbf16>, vector<2x32xf32> -> vector<2x32xf32>
    %286 = arith.addf %283, %285 : vector<2x32xf32>
    %287 = math.tanh %286 : vector<2x32xf32>
    %288 = arith.truncf %287 : vector<2x32xf32> to vector<2x32xbf16>
    %cst_123 = arith.constant dense<0.000000e+00> : vector<2x160xf32>
    %289 = tpu.matmul %288, %8, %cst_123 {dimension_numbers = #tpu.dot_dimension_numbers<[1], [0], [0], [1], [0, 0, 1, 1], [], []>} : vector<2x32xbf16>, vector<32x160xbf16>, vector<2x160xf32> -> vector<2x160xf32>
    %290 = arith.truncf %268 : vector<2x32xf32> to vector<2x32xbf16>
    %cst_124 = arith.constant dense<0.000000e+00> : vector<2x160xf32>
    %291 = tpu.matmul %290, %9, %cst_124 {dimension_numbers = #tpu.dot_dimension_numbers<[1], [0], [0], [1], [0, 0, 1, 1], [], []>} : vector<2x32xbf16>, vector<32x160xbf16>, vector<2x160xf32> -> vector<2x160xf32>
    %292 = arith.addf %289, %291 : vector<2x160xf32>
    %293 = vector.extract_strided_slice %292 {offsets = [0, 0], sizes = [2, 128], strides = [1, 1]} : vector<2x160xf32> to vector<2x128xf32>
    %294 = arith.truncf %263 : vector<2x128xf32> to vector<2x128xbf16>
    %cst_125 = arith.constant dense<0.000000e+00> : vector<2x128xf32>
    %295 = tpu.matmul %294, %10, %cst_125 {dimension_numbers = #tpu.dot_dimension_numbers<[1], [0], [0], [1], [0, 0, 1, 1], [], []>} : vector<2x128xbf16>, vector<128x128xbf16>, vector<2x128xf32> -> vector<2x128xf32>
    %296 = arith.addf %293, %295 : vector<2x128xf32>
    %297 = vector.extract_strided_slice %292 {offsets = [0, 128], sizes = [2, 32], strides = [1, 1]} : vector<2x160xf32> to vector<2x32xf32>
    %298 = arith.truncf %296 : vector<2x128xf32> to vector<2x128xbf16>
    %cst_126 = arith.constant dense<0.000000e+00> : vector<2x32xf32>
    %299 = tpu.matmul %298, %11, %cst_126 {dimension_numbers = #tpu.dot_dimension_numbers<[1], [0], [0], [1], [0, 0, 1, 1], [], []>} : vector<2x128xbf16>, vector<128x32xbf16>, vector<2x32xf32> -> vector<2x32xf32>
    %300 = arith.addf %297, %299 : vector<2x32xf32>
    %301 = math.tanh %300 : vector<2x32xf32>
    %c6_i32_127 = arith.constant 6 : i32
    %302 = arith.index_cast %c6_i32_127 : i32 to index
    %c0_128 = arith.constant 0 : index
    %c0_129 = arith.constant 0 : index
    %303 = vector.load %arg1[%302, %c0_128, %c0_129] : memref<8x2x4xf32, #tpu.memory_space<vmem>>, vector<1x2x4xf32>
    %304 = vector.shape_cast %303 : vector<1x2x4xf32> to vector<2x4xf32>
    %305 = arith.mulf %304, %96 : vector<2x4xf32>
    %306 = arith.addf %305, %99 : vector<2x4xf32>
    %307 = arith.truncf %306 : vector<2x4xf32> to vector<2x4xbf16>
    %cst_130 = arith.constant dense<0.000000e+00> : vector<2x160xf32>
    %308 = tpu.matmul %307, %4, %cst_130 {dimension_numbers = #tpu.dot_dimension_numbers<[1], [0], [0], [1], [0, 0, 1, 1], [], []>} : vector<2x4xbf16>, vector<4x160xbf16>, vector<2x160xf32> -> vector<2x160xf32>
    %309 = arith.truncf %287 : vector<2x32xf32> to vector<2x32xbf16>
    %cst_131 = arith.constant dense<0.000000e+00> : vector<2x160xf32>
    %310 = tpu.matmul %309, %5, %cst_131 {dimension_numbers = #tpu.dot_dimension_numbers<[1], [0], [0], [1], [0, 0, 1, 1], [], []>} : vector<2x32xbf16>, vector<32x160xbf16>, vector<2x160xf32> -> vector<2x160xf32>
    %311 = arith.addf %308, %310 : vector<2x160xf32>
    %312 = vector.extract_strided_slice %311 {offsets = [0, 0], sizes = [2, 128], strides = [1, 1]} : vector<2x160xf32> to vector<2x128xf32>
    %313 = arith.truncf %282 : vector<2x128xf32> to vector<2x128xbf16>
    %cst_132 = arith.constant dense<0.000000e+00> : vector<2x128xf32>
    %314 = tpu.matmul %313, %6, %cst_132 {dimension_numbers = #tpu.dot_dimension_numbers<[1], [0], [0], [1], [0, 0, 1, 1], [], []>} : vector<2x128xbf16>, vector<128x128xbf16>, vector<2x128xf32> -> vector<2x128xf32>
    %315 = arith.addf %312, %314 : vector<2x128xf32>
    %316 = vector.extract_strided_slice %311 {offsets = [0, 128], sizes = [2, 32], strides = [1, 1]} : vector<2x160xf32> to vector<2x32xf32>
    %317 = arith.truncf %315 : vector<2x128xf32> to vector<2x128xbf16>
    %cst_133 = arith.constant dense<0.000000e+00> : vector<2x32xf32>
    %318 = tpu.matmul %317, %7, %cst_133 {dimension_numbers = #tpu.dot_dimension_numbers<[1], [0], [0], [1], [0, 0, 1, 1], [], []>} : vector<2x128xbf16>, vector<128x32xbf16>, vector<2x32xf32> -> vector<2x32xf32>
    %319 = arith.addf %316, %318 : vector<2x32xf32>
    %320 = math.tanh %319 : vector<2x32xf32>
    %321 = arith.truncf %320 : vector<2x32xf32> to vector<2x32xbf16>
    %cst_134 = arith.constant dense<0.000000e+00> : vector<2x160xf32>
    %322 = tpu.matmul %321, %8, %cst_134 {dimension_numbers = #tpu.dot_dimension_numbers<[1], [0], [0], [1], [0, 0, 1, 1], [], []>} : vector<2x32xbf16>, vector<32x160xbf16>, vector<2x160xf32> -> vector<2x160xf32>
    %323 = arith.truncf %301 : vector<2x32xf32> to vector<2x32xbf16>
    %cst_135 = arith.constant dense<0.000000e+00> : vector<2x160xf32>
    %324 = tpu.matmul %323, %9, %cst_135 {dimension_numbers = #tpu.dot_dimension_numbers<[1], [0], [0], [1], [0, 0, 1, 1], [], []>} : vector<2x32xbf16>, vector<32x160xbf16>, vector<2x160xf32> -> vector<2x160xf32>
    %325 = arith.addf %322, %324 : vector<2x160xf32>
    %326 = vector.extract_strided_slice %325 {offsets = [0, 0], sizes = [2, 128], strides = [1, 1]} : vector<2x160xf32> to vector<2x128xf32>
    %327 = arith.truncf %296 : vector<2x128xf32> to vector<2x128xbf16>
    %cst_136 = arith.constant dense<0.000000e+00> : vector<2x128xf32>
    %328 = tpu.matmul %327, %10, %cst_136 {dimension_numbers = #tpu.dot_dimension_numbers<[1], [0], [0], [1], [0, 0, 1, 1], [], []>} : vector<2x128xbf16>, vector<128x128xbf16>, vector<2x128xf32> -> vector<2x128xf32>
    %329 = arith.addf %326, %328 : vector<2x128xf32>
    %330 = vector.extract_strided_slice %325 {offsets = [0, 128], sizes = [2, 32], strides = [1, 1]} : vector<2x160xf32> to vector<2x32xf32>
    %331 = arith.truncf %329 : vector<2x128xf32> to vector<2x128xbf16>
    %cst_137 = arith.constant dense<0.000000e+00> : vector<2x32xf32>
    %332 = tpu.matmul %331, %11, %cst_137 {dimension_numbers = #tpu.dot_dimension_numbers<[1], [0], [0], [1], [0, 0, 1, 1], [], []>} : vector<2x128xbf16>, vector<128x32xbf16>, vector<2x32xf32> -> vector<2x32xf32>
    %333 = arith.addf %330, %332 : vector<2x32xf32>
    %334 = math.tanh %333 : vector<2x32xf32>
    %c7_i32_138 = arith.constant 7 : i32
    %335 = arith.index_cast %c7_i32_138 : i32 to index
    %c0_139 = arith.constant 0 : index
    %c0_140 = arith.constant 0 : index
    %336 = vector.load %arg1[%335, %c0_139, %c0_140] : memref<8x2x4xf32, #tpu.memory_space<vmem>>, vector<1x2x4xf32>
    %337 = vector.shape_cast %336 : vector<1x2x4xf32> to vector<2x4xf32>
    %338 = arith.mulf %337, %96 : vector<2x4xf32>
    %339 = arith.addf %338, %99 : vector<2x4xf32>
    %340 = arith.truncf %339 : vector<2x4xf32> to vector<2x4xbf16>
    %cst_141 = arith.constant dense<0.000000e+00> : vector<2x160xf32>
    %341 = tpu.matmul %340, %4, %cst_141 {dimension_numbers = #tpu.dot_dimension_numbers<[1], [0], [0], [1], [0, 0, 1, 1], [], []>} : vector<2x4xbf16>, vector<4x160xbf16>, vector<2x160xf32> -> vector<2x160xf32>
    %342 = arith.truncf %320 : vector<2x32xf32> to vector<2x32xbf16>
    %cst_142 = arith.constant dense<0.000000e+00> : vector<2x160xf32>
    %343 = tpu.matmul %342, %5, %cst_142 {dimension_numbers = #tpu.dot_dimension_numbers<[1], [0], [0], [1], [0, 0, 1, 1], [], []>} : vector<2x32xbf16>, vector<32x160xbf16>, vector<2x160xf32> -> vector<2x160xf32>
    %344 = arith.addf %341, %343 : vector<2x160xf32>
    %345 = vector.extract_strided_slice %344 {offsets = [0, 0], sizes = [2, 128], strides = [1, 1]} : vector<2x160xf32> to vector<2x128xf32>
    %346 = arith.truncf %315 : vector<2x128xf32> to vector<2x128xbf16>
    %cst_143 = arith.constant dense<0.000000e+00> : vector<2x128xf32>
    %347 = tpu.matmul %346, %6, %cst_143 {dimension_numbers = #tpu.dot_dimension_numbers<[1], [0], [0], [1], [0, 0, 1, 1], [], []>} : vector<2x128xbf16>, vector<128x128xbf16>, vector<2x128xf32> -> vector<2x128xf32>
    %348 = arith.addf %345, %347 : vector<2x128xf32>
    %349 = vector.extract_strided_slice %344 {offsets = [0, 128], sizes = [2, 32], strides = [1, 1]} : vector<2x160xf32> to vector<2x32xf32>
    %350 = arith.truncf %348 : vector<2x128xf32> to vector<2x128xbf16>
    %cst_144 = arith.constant dense<0.000000e+00> : vector<2x32xf32>
    %351 = tpu.matmul %350, %7, %cst_144 {dimension_numbers = #tpu.dot_dimension_numbers<[1], [0], [0], [1], [0, 0, 1, 1], [], []>} : vector<2x128xbf16>, vector<128x32xbf16>, vector<2x32xf32> -> vector<2x32xf32>
    %352 = arith.addf %349, %351 : vector<2x32xf32>
    %353 = math.tanh %352 : vector<2x32xf32>
    %354 = arith.truncf %353 : vector<2x32xf32> to vector<2x32xbf16>
    %cst_145 = arith.constant dense<0.000000e+00> : vector<2x160xf32>
    %355 = tpu.matmul %354, %8, %cst_145 {dimension_numbers = #tpu.dot_dimension_numbers<[1], [0], [0], [1], [0, 0, 1, 1], [], []>} : vector<2x32xbf16>, vector<32x160xbf16>, vector<2x160xf32> -> vector<2x160xf32>
    %356 = arith.truncf %334 : vector<2x32xf32> to vector<2x32xbf16>
    %cst_146 = arith.constant dense<0.000000e+00> : vector<2x160xf32>
    %357 = tpu.matmul %356, %9, %cst_146 {dimension_numbers = #tpu.dot_dimension_numbers<[1], [0], [0], [1], [0, 0, 1, 1], [], []>} : vector<2x32xbf16>, vector<32x160xbf16>, vector<2x160xf32> -> vector<2x160xf32>
    %358 = arith.addf %355, %357 : vector<2x160xf32>
    %359 = vector.extract_strided_slice %358 {offsets = [0, 0], sizes = [2, 128], strides = [1, 1]} : vector<2x160xf32> to vector<2x128xf32>
    %360 = arith.truncf %329 : vector<2x128xf32> to vector<2x128xbf16>
    %cst_147 = arith.constant dense<0.000000e+00> : vector<2x128xf32>
    %361 = tpu.matmul %360, %10, %cst_147 {dimension_numbers = #tpu.dot_dimension_numbers<[1], [0], [0], [1], [0, 0, 1, 1], [], []>} : vector<2x128xbf16>, vector<128x128xbf16>, vector<2x128xf32> -> vector<2x128xf32>
    %362 = arith.addf %359, %361 : vector<2x128xf32>
    %363 = vector.extract_strided_slice %358 {offsets = [0, 128], sizes = [2, 32], strides = [1, 1]} : vector<2x160xf32> to vector<2x32xf32>
    %364 = arith.truncf %362 : vector<2x128xf32> to vector<2x128xbf16>
    %cst_148 = arith.constant dense<0.000000e+00> : vector<2x32xf32>
    %365 = tpu.matmul %364, %11, %cst_148 {dimension_numbers = #tpu.dot_dimension_numbers<[1], [0], [0], [1], [0, 0, 1, 1], [], []>} : vector<2x128xbf16>, vector<128x32xbf16>, vector<2x32xf32> -> vector<2x32xf32>
    %366 = arith.addf %363, %365 : vector<2x32xf32>
    %367 = math.tanh %366 : vector<2x32xf32>
    %c8_i32_149 = arith.constant 8 : i32
    %368 = math.tanh %353 : vector<2x32xf32>
    %369 = arith.truncf %368 : vector<2x32xf32> to vector<2x32xbf16>
    %cst_150 = arith.constant dense<0.000000e+00> : vector<2x128xf32>
    %370 = tpu.matmul %369, %12, %cst_150 {dimension_numbers = #tpu.dot_dimension_numbers<[1], [0], [0], [1], [0, 0, 1, 1], [], []>} : vector<2x32xbf16>, vector<32x128xbf16>, vector<2x128xf32> -> vector<2x128xf32>
    %371 = math.tanh %367 : vector<2x32xf32>
    %372 = arith.truncf %371 : vector<2x32xf32> to vector<2x32xbf16>
    %cst_151 = arith.constant dense<0.000000e+00> : vector<2x128xf32>
    %373 = tpu.matmul %372, %13, %cst_151 {dimension_numbers = #tpu.dot_dimension_numbers<[1], [0], [0], [1], [0, 0, 1, 1], [], []>} : vector<2x32xbf16>, vector<32x128xbf16>, vector<2x128xf32> -> vector<2x128xf32>
    %374 = arith.addf %370, %373 : vector<2x128xf32>
    %375 = vector.broadcast %14 : vector<1x128xf32> to vector<2x128xf32>
    %376 = arith.addf %374, %375 : vector<2x128xf32>
    %c0_152 = arith.constant 0 : index
    %c0_153 = arith.constant 0 : index
    %377 = vector.load %arg17[%c0_152, %c0_153] : memref<2x128xf32, #tpu.memory_space<vmem>>, vector<2x128xf32>
    tpu.vector_store %arg17[%c0_152, %c0_153], %376 {strides = array<i32>} : memref<2x128xf32, #tpu.memory_space<vmem>>, vector<2x128xf32>,
    return
  }
  func.func @transform_0(%arg0: i32) -> (i32, i32, i32) {
    %c0_i32 = arith.constant 0 : i32
    %c0_i32_0 = arith.constant 0 : i32
    %c0_i32_1 = arith.constant 0 : i32
    return %c0_i32, %arg0, %c0_i32_0 : i32, i32, i32
  }
  func.func @transform_1(%arg0: i32) -> (i32, i32) {
    %c0_i32 = arith.constant 0 : i32
    %c0_i32_0 = arith.constant 0 : i32
    %c0_i32_1 = arith.constant 0 : i32
    return %c0_i32, %c0_i32_0 : i32, i32
  }
  func.func @transform_2(%arg0: i32) -> (i32, i32) {
    %c0_i32 = arith.constant 0 : i32
    %c0_i32_0 = arith.constant 0 : i32
    %c0_i32_1 = arith.constant 0 : i32
    return %c0_i32, %c0_i32_0 : i32, i32
  }
  func.func @transform_3(%arg0: i32) -> (i32, i32) {
    %c0_i32 = arith.constant 0 : i32
    %c0_i32_0 = arith.constant 0 : i32
    %c0_i32_1 = arith.constant 0 : i32
    return %c0_i32, %c0_i32_0 : i32, i32
  }
  func.func @transform_4(%arg0: i32) -> (i32, i32) {
    %c0_i32 = arith.constant 0 : i32
    %c0_i32_0 = arith.constant 0 : i32
    %c0_i32_1 = arith.constant 0 : i32
    return %c0_i32, %c0_i32_0 : i32, i32
  }
  func.func @transform_5(%arg0: i32) -> (i32, i32) {
    %c0_i32 = arith.constant 0 : i32
    %c0_i32_0 = arith.constant 0 : i32
    %c0_i32_1 = arith.constant 0 : i32
    return %c0_i32, %c0_i32_0 : i32, i32
  }
  func.func @transform_6(%arg0: i32) -> (i32, i32) {
    %c0_i32 = arith.constant 0 : i32
    %c0_i32_0 = arith.constant 0 : i32
    %c0_i32_1 = arith.constant 0 : i32
    return %c0_i32, %c0_i32_0 : i32, i32
  }
  func.func @transform_7(%arg0: i32) -> (i32, i32) {
    %c0_i32 = arith.constant 0 : i32
    %c0_i32_0 = arith.constant 0 : i32
    %c0_i32_1 = arith.constant 0 : i32
    return %c0_i32, %c0_i32_0 : i32, i32
  }
  func.func @transform_8(%arg0: i32) -> (i32, i32) {
    %c0_i32 = arith.constant 0 : i32
    %c0_i32_0 = arith.constant 0 : i32
    %c0_i32_1 = arith.constant 0 : i32
    return %c0_i32, %c0_i32_0 : i32, i32
  }
  func.func @transform_9(%arg0: i32) -> (i32, i32) {
    %c0_i32 = arith.constant 0 : i32
    %c0_i32_0 = arith.constant 0 : i32
    %c0_i32_1 = arith.constant 0 : i32
    return %c0_i32, %c0_i32_0 : i32, i32
  }
  func.func @transform_10(%arg0: i32) -> (i32, i32) {
    %c0_i32 = arith.constant 0 : i32
    %c0_i32_0 = arith.constant 0 : i32
    %c0_i32_1 = arith.constant 0 : i32
    return %c0_i32, %c0_i32_0 : i32, i32
  }
  func.func @transform_11(%arg0: i32) -> (i32, i32) {
    %c0_i32 = arith.constant 0 : i32
    %c0_i32_0 = arith.constant 0 : i32
    %c0_i32_1 = arith.constant 0 : i32
    return %c0_i32, %c0_i32_0 : i32, i32
  }
  func.func @transform_12(%arg0: i32) -> (i32, i32) {
    %c0_i32 = arith.constant 0 : i32
    %c0_i32_0 = arith.constant 0 : i32
    %c0_i32_1 = arith.constant 0 : i32
    return %c0_i32, %c0_i32_0 : i32, i32
  }
  func.func @transform_13(%arg0: i32) -> (i32, i32) {
    %c0_i32 = arith.constant 0 : i32
    %c0_i32_0 = arith.constant 0 : i32
    %c0_i32_1 = arith.constant 0 : i32
    return %c0_i32, %c0_i32_0 : i32, i32
  }
  func.func @transform_14(%arg0: i32) -> (i32, i32) {
    %c0_i32 = arith.constant 0 : i32
    %c0_i32_0 = arith.constant 0 : i32
    %c0_i32_1 = arith.constant 0 : i32
    return %c0_i32, %c0_i32_0 : i32, i32
  }
  func.func @transform_15(%arg0: i32) -> (i32, i32) {
    %c0_i32 = arith.constant 0 : i32
    %c0_i32_0 = arith.constant 0 : i32
    %c0_i32_1 = arith.constant 0 : i32
    return %c0_i32, %c0_i32_0 : i32, i32
  }
  func.func @transform_16(%arg0: i32) -> (i32, i32) {
    %c0_i32 = arith.constant 0 : i32
    %c0_i32_0 = arith.constant 0 : i32
    return %arg0, %c0_i32 : i32, i32
  }
}

</mosaic_0001>

<bundles_post_ra>
// kernel: tpu_custom_call.1
= control target key start
LH: loop header
LB: loop body
LE: loop exit
PB: predicated region body
PF: predicated region fallthrough
CT: control target
= control target key end

     0   :  { %s3957_s0 = inlined_call_operand.vmem [shape: f32[8,2,4], index: 0, kind: input, shape index: {}]   ;;  %s3958_s1 = inlined_call_operand.hbm [shape: f32[4,4], index: 1, kind: input, shape index: {}]   ;;  %s3959_s2 = inlined_call_operand.hbm [shape: f32[4,4], index: 2, kind: input, shape index: {}]   ;;  %s3960_s3 = inlined_call_operand.hbm [shape: f32[4,4], index: 3, kind: input, shape index: {}]   ;;  %s3961_s4 = inlined_call_operand.hbm [shape: f32[1,4], index: 4, kind: input, shape index: {}]   ;;  %s3962_s5 = inlined_call_operand.hbm [shape: bf16[4,160], index: 5, kind: input, shape index: {}]   ;;  %s3963_s6 = inlined_call_operand.hbm [shape: bf16[32,160], index: 6, kind: input, shape index: {}]   ;;  %s3964_s7 = inlined_call_operand.vmem [shape: bf16[128,128], index: 7, kind: input, shape index: {}]   ;;  %s3965_s8 = inlined_call_operand.vmem [shape: bf16[128,32], index: 8, kind: input, shape index: {}]   ;;  %s3966_s9 = inlined_call_operand.hbm [shape: bf16[32,160], index: 9, kind: input, shape index: {}]   ;;  %s3967_s10 = inlined_call_operand.hbm [shape: bf16[32,160], index: 10, kind: input, shape index: {}]   ;;  %s3968_s11 = inlined_call_operand.vmem [shape: bf16[128,128], index: 11, kind: input, shape index: {}]   ;;  %s3969_s12 = inlined_call_operand.vmem [shape: bf16[128,32], index: 12, kind: input, shape index: {}]   ;;  %s3970_s13 = inlined_call_operand.vmem [shape: bf16[32,128], index: 13, kind: input, shape index: {}]   ;;  %s3971_s14 = inlined_call_operand.vmem [shape: bf16[32,128], index: 14, kind: input, shape index: {}]   ;;  %s3972_s15 = inlined_call_operand.vmem [shape: f32[1,128], index: 15, kind: input, shape index: {}]   ;;  %s3973_s16 = inlined_call_operand.hbm [shape: f32[2,128], index: 16, kind: output, shape index: {}]  }
   0x1   :  { %3975 = sst [smem:[#allocation23_spill]] %s3957_s0 }
   0x2   :  { %21 = vsyncpa [#allocation3], 0 }
   0x3   :  { %22 = vsyncpa [#allocation6], 0 }
   0x4   :  { %23 = vsyncpa [#allocation9], 0 }
   0x5   :  { %24 = vsyncpa [#allocation12], 0 }
   0x6   :  { %25 = vsyncpa [#allocation15], 0  ;;  %s45_s23 = sshll.u32 %s3959_s2, 4  ;;  %s46_s23 = int_to_ptr.hbm [resolvable:$true] %s45_s23 }
   0x7   :  { %26 = vsyncpa [#allocation4], 0  ;;  %s2884_s24 = smov [#allocation5]   ;;  %s67_s28 = sshll.u32 %s3961_s4, 4  ;;  %s68_s28 = int_to_ptr.hbm [resolvable:$true] %s67_s28 }
   0x8   :  { %s47_s25 = sshll.u32 %s2884_s24, 4  ;;  %s2885_s29 = smov [#allocation8]   ;;  %s48_s25 = int_to_ptr.vmem [resolvable:$true] %s47_s25 }
   0x9   :  { %50 = dma.hbm_to_vmem [thread:$0]  %s46_s23, 64, %s48_s25, [#allocation6]  }
   0xa   :  { %s69_s30 = sshll.u32 %s2885_s29, 4  ;;  %s88_s18 = sshll.u32 %s3963_s6, 4  ;;  %s70_s30 = int_to_ptr.vmem [resolvable:$true] %s69_s30  ;;  %s89_s18 = int_to_ptr.hbm [resolvable:$true] %s88_s18 }
   0xb   :  { %72 = dma.hbm_to_vmem [thread:$0]  %s68_s28, 16, %s70_s30, [#allocation9]  }
   0xc   :  { %s2886_s2 = smov [#allocation11]   ;;  %s34_s22 = sshll.u32 %s3958_s1, 4  ;;  %s35_s22 = int_to_ptr.hbm [resolvable:$true] %s34_s22 }
   0xd   :  { %s90_s19 = sshll.u32 %s2886_s2, 4  ;;  %s2887_s24 = smov 128   ;;  %s91_s19 = int_to_ptr.vmem [resolvable:$true] %s90_s19 }
   0xe   :  { %s2888_s4 = smov 8   ;;  %s2889_s23 = smov [#allocation2]  }
   0xf   :  { %96 = dma.hbm_to_vmem [thread:$0]  %s89_s18, 512, %s91_s19, [#allocation12], %s2887_s24, %s2887_s24, %s2888_s4  }
  0x10   :  { %s36_s25 = sshll.u32 %s2889_s23, 4  ;;  %s56_s27 = sshll.u32 %s3960_s3, 4  ;;  %s37_s25 = int_to_ptr.vmem [resolvable:$true] %s36_s25  ;;  %s57_s27 = int_to_ptr.hbm [resolvable:$true] %s56_s27 }
  0x11   :  { %39 = dma.hbm_to_vmem [thread:$0]  %s35_s22, 64, %s37_s25, [#allocation3]  }
  0x12   :  { %s78_s1 = sshll.u32 %s3962_s5, 4  ;;  %s2890_s30 = smov [#allocation7]   ;;  %s79_s1 = int_to_ptr.hbm [resolvable:$true] %s78_s1 }
  0x13   :  { %s58_s0 = sshll.u32 %s2890_s30, 4  ;;  %s2891_s17 = smov [#allocation10]   ;;  %s59_s0 = int_to_ptr.vmem [resolvable:$true] %s58_s0 }
  0x14   :  { %61 = dma.hbm_to_vmem [thread:$0]  %s57_s27, 64, %s59_s0, [#allocation6]  }
  0x15   :  { %s80_s18 = sshll.u32 %s2891_s17, 4  ;;  %s105_s20 = sshll.u32 %s3966_s9, 4  ;;  %s81_s18 = int_to_ptr.vmem [resolvable:$true] %s80_s18  ;;  %s106_s20 = int_to_ptr.hbm [resolvable:$true] %s105_s20 }
  0x16   :  { %83 = dma.hbm_to_vmem [thread:$0]  %s79_s1, 64, %s81_s18, [#allocation9]  }
  0x17   :  { %s118_s22 = sshll.u32 %s3967_s10, 4  ;;  %s2892_s23 = smov [#allocation13]   ;;  %s119_s22 = int_to_ptr.hbm [resolvable:$true] %s118_s22 }
  0x18   :  { %s107_s5 = sshll.u32 %s2892_s23, 4  ;;  %s2893_s25 = smov [#allocation14]   ;;  %s108_s5 = int_to_ptr.vmem [resolvable:$true] %s107_s5 }
  0x19   :  { %113 = dma.hbm_to_vmem [thread:$0]  %s106_s20, 512, %s108_s5, [#allocation12], %s2887_s24, %s2887_s24, %s2888_s4  }
  0x1a   :  { %s120_s6 = sshll.u32 %s2893_s25, 4  ;;  %s121_s6 = int_to_ptr.vmem [resolvable:$true] %s120_s6 }
  0x1b   :  { %126 = dma.hbm_to_vmem [thread:$0]  %s119_s22, 512, %s121_s6, [#allocation15], %s2887_s24, %s2887_s24, %s2888_s4  }
  0x1c   :  { %2872 = dma.done.wait [#allocation3], 64  }
  0x1d   :  { %2873 = vsyncadd [#allocation3], 4294967232 }
  0x1e   :  { %2874 = dma.done.wait [#allocation6], 128  }
  0x1f   :  { %2875 = vsyncadd [#allocation6], 4294967168 }
  0x20   :  { %2876 = dma.done.wait [#allocation9], 80  }
  0x21   :  { %2877 = vsyncadd [#allocation9], 4294967216 }
  0x22   :  { %2878 = dma.done.wait [#allocation12], 1024  }
  0x23   :  { %2879 = vsyncadd [#allocation12], 4294966272 }
  0x24   :  { %2880 = dma.done.wait [#allocation15], 512  }
  0x25   :  { %2881 = vsyncadd [#allocation15], 4294966784  ;;  %vm305_vm0 = vcmask 1043456   ;;  %v170_v0 = vld [vmem:[#allocation2] sm:$0xf]  ;;  %s3976_s26 = sld [smem:[#allocation23_spill]] }
  0x26   :  { %2257 = vmatpush.msk.msra.mxu1 %vm305_vm0, %v170_v0  ;;  %vm301_vm1 = vcmask 31744   ;;  %v171_v23 = vld [vmem:[#allocation5] sm:$0xf]  ;;  %v172_v52 = vld [vmem:[#allocation7] sm:$0xf]  ;;  %v3096_v59 = vld [vmem:[%s3964_s7 + $0x38] sm:$0xff] }
  0x27   :  { %2261 = vmatpush.msk.msra.mxu2 %vm305_vm0, %v172_v52  ;;  %v2274_v53 = vld [vmem:[#allocation11 + $0x10] sm:$0xf]  ;;  %v2521_v54 = vld [vmem:[#allocation11 + $0x14] sm:$0xf0]  ;;  %v2266_v55 = vld [vmem:[#allocation11] sm:$0xf] }
  0x28   :  { %2259 = vmatpush.msk.msrb.mxu1 %vm305_vm0, %v171_v23  ;;  %v3088_v56 = vor.u32 %v2521_v54, %v2274_v53  ;;  %v2519_v57 = vld [vmem:[#allocation11 + $0x4] sm:$0xf0]  ;;  %vm490_vm5 = vcmask 1041408   ;;  %vm453_vm10 = vcmask 261120   ;;  %s2895_s30 = smov [#allocation16]   ;;  %s2236_s17 = sshll.u32 %s3973_s16, 4  ;;  %s2237_s17 = int_to_ptr.hbm [resolvable:$true] %s2236_s17 }
  0x29   :  { %v3091_v58 = vor.u32 %v2519_v57, %v2266_v55  ;;  %s2234_s0 = sshll.u32 %s2895_s30, 4  ;;  %s2235_s0 = int_to_ptr.vmem [resolvable:$true] %s2234_s0 }
  0x2a   :  { %463 = vmatpush.bf16.msra.mxu3 %v3088_v56 }
  0x2b   :  { %v3017_v1 = vld [vmem:[%s3976_s26] sm:$0x3]  ;;  %v3022_v2 = vld [vmem:[%s3976_s26 + $0x2] sm:$0x3]  ;;  %v3030_v4 = vld [vmem:[%s3976_s26 + $0x4] sm:$0x3] }
  0x2c   :  { %v266_v3 = vadd.f32 %v3022_v2, %v3017_v1  ;;  %v3035_v5 = vld [vmem:[%s3976_s26 + $0x6] sm:$0x3]  ;;  %v3041_v7 = vld [vmem:[%s3976_s26 + $0x8] sm:$0x3]  ;;  %v3047_v9 = vld [vmem:[%s3976_s26 + $0xa] sm:$0x3]  ;;  %v262_v17 = vmul.f32 %v3017_v1, %v3017_v1  ;;  %v267_v18 = vmul.f32 %v3022_v2, %v3022_v2  ;;  %v272_v20 = vmul.f32 %v3030_v4, %v3030_v4 }
  0x2d   :  { %v3053_v11 = vld [vmem:[%s3976_s26 + $0xc] sm:$0x3]  ;;  %v3059_v13 = vld [vmem:[%s3976_s26 + $0xe] sm:$0x3]  ;;  %v277_v22 = vmul.f32 %v3035_v5, %v3035_v5  ;;  %v282_v25 = vmul.f32 %v3041_v7, %v3041_v7  ;;  %v287_v27 = vmul.f32 %v3047_v9, %v3047_v9 }
  0x2e   :  { %v271_v6 = vadd.f32 %v3030_v4, %v266_v3  ;;  %v268_v19 = vadd.f32 %v267_v18, %v262_v17  ;;  %v292_v29 = vmul.f32 %v3053_v11, %v3053_v11  ;;  %v297_v31 = vmul.f32 %v3059_v13, %v3059_v13  ;;  %464 = vmatpush.bf16.msra.mxu3 %v3091_v58  ;;  %v3108_v3 = vld [vmem:[%s3964_s7 + $0x30] sm:$0xff] }
  0x2f   :  { %v3148_v17 = vld [vmem:[#allocation10] sm:$0xf]  ;;  %v2578_v18 = vld [vmem:[#allocation8] ss:$0 sm:$0xff] }
  0x30   :  { %v276_v8 = vadd.f32 %v3035_v5, %v271_v6  ;;  %v273_v21 = vadd.f32 %v272_v20, %v268_v19  ;;  %v3114_v6 = vld [vmem:[%s3964_s7 + $0x28] sm:$0xff]  ;;  %484 = vst [vmem:[#allocation1] ss:$4 sm:$0xff] %v3148_v17  ;;  %v2276_v20 = vld [vmem:[#allocation11 + $0x18] sm:$0xf0] }
  0x31   :  { %v2520_v19 = vld [vmem:[#allocation11 + $0x14] sm:$0xf] }
  0x32   :  { %v281_v10 = vadd.f32 %v3041_v7, %v276_v8  ;;  %v278_v24 = vadd.f32 %v277_v22, %v273_v21  ;;  %569 = vmatpush.bf16.msrb.mxu3 %v3096_v59  ;;  %v3120_v8 = vld [vmem:[%s3964_s7 + $0x20] sm:$0xff]  ;;  %v3152_v22 = vor.u32 %v2520_v19, %v2276_v20 }
  0x34   :  { %v286_v12 = vadd.f32 %v3047_v9, %v281_v10  ;;  %v283_v26 = vadd.f32 %v282_v25, %v278_v24  ;;  %v3126_v10 = vld [vmem:[%s3964_s7 + $0x18] sm:$0xff]  ;;  %476 = vmatpush.bf16.msra.mxu0 %v3152_v22 }
  0x36   :  { %v291_v14 = vadd.f32 %v3053_v11, %v286_v12  ;;  %v288_v28 = vadd.f32 %v287_v27, %v283_v26  ;;  %570 = vmatpush.bf16.msrb.mxu3 %v3108_v3  ;;  %v2894_v12 = vmov 0  }
  0x37   :  { %465 = vmatmul.bf16.vlgmr.msra.gmra.mxu3 %v2894_v12  ;;  %v485_v24 = vld.sshfl [vmem:[#allocation1] sm:$0xff pattern:$0x73625140]  ;;  %v486_v25 = vld.sshfl [vmem:[#allocation1 + $0x8] sm:$0xff pattern:$0x73625140] }
  0x38   :  { %v296_v15 = vadd.f32 %v3059_v13, %v291_v14  ;;  %v293_v30 = vadd.f32 %v292_v29, %v288_v28  ;;  %v3133_v14 = vld [vmem:[%s3964_s7 + $0x10] sm:$0xff]  ;;  %v491_v27 = vsel %vm490_vm5, %v485_v24, 0  ;;  %v493_v28 = vsel %vm490_vm5, %v486_v25, 0  ;;  %898 = vst [vmem:[#allocation1] ss:$4 sm:$0xff] %v3148_v17  ;;  %v3271_v24 = vld [vmem:[%s3965_s8 + $0x20] sm:$0xff] }
  0x39   :  { %515 = vmatpush.bf16.msrb.mxu2 %v493_v28  ;;  %v2518_v29 = vld [vmem:[#allocation11 + $0x4] sm:$0xf] }
  0x3a   :  { %v299_v16 = vmul.f32 0.125, %v296_v15  ;;  %v298_v32 = vadd.f32 %v297_v31, %v293_v30  ;;  %571 = vmatpush.bf16.msrb.mxu3 %v3114_v6  ;;  %v3139_v15 = vld [vmem:[%s3964_s7 + $0x8] sm:$0xff]  ;;  %v3161_v31 = vld [vmem:[%s3968_s11 + $0x38] sm:$0xff] }
  0x3b   :  { %v2268_v30 = vld [vmem:[#allocation11 + $0x8] sm:$0xf0]  ;;  %v3278_v25 = vld [vmem:[%s3965_s8 + $0x18] sm:$0xff] }
  0x3c   :  { %2258 = vmatmul.msk.f32.vlgmr.msra.gmra.mxu1 %vm301_vm1, %v299_v16  ;;  %v300_v34 = vmul.f32 0.125, %v298_v32  ;;  %v3163_v32 = vor.u32 %v2518_v29, %v2268_v30  ;;  %v3292_v30 = vld [vmem:[%s3965_s8 + $0x8] sm:$0xff] }
  0x3d   :  { %502 = vmatpush.bf16.msra.mxu1 %v491_v27 }
  0x3e   :  { %572 = vmatpush.bf16.msrb.mxu3 %v3120_v8  ;;  %477 = vmatpush.bf16.msra.mxu0 %v3163_v32 }
  0x41   :  { %478 = vmatmul.bf16.vlgmr.msra.gmra.mxu0 %v2894_v12 }
  0x42   :  { %573 = vmatpush.bf16.msrb.mxu3 %v3126_v10 }
  0x46   :  { %574 = vmatpush.bf16.msrb.mxu3 %v3133_v14 }
  0x4a   :  { %575 = vmatpush.bf16.msrb.mxu3 %v3139_v15 }
  0xb9   :  { %v3081_v33 = vpop.f32.mrf.mxu1 }
  0xba   :  { %v329_v35 = vmul.f32 2.0, %v3081_v33  ;;  %v332_v38 = vmul.f32 %v3081_v33, %v3081_v33  ;;  %v377_v62 = vsub.f32 %v299_v16, %v3081_v33  ;;  %v428_v53 = vsub.f32 0.0, %v3081_v33  ;;  %v466_v27 = vpop.f32.mrf.mxu3 }
  0xbc   :  { %v330_v36 = vmul.f32 %v329_v35, %v299_v16  ;;  %v3145_v16 = vld [vmem:[%s3964_s7] sm:$0xff]  ;;  %v3175_v35 = vld [vmem:[%s3965_s8 + $0x38] sm:$0xff] }
  0xbd   :  { %576 = vmatpush.bf16.msrb.mxu3 %v3145_v16  ;;  %632 = vmatpush.bf16.msrb.mxu0 %v3175_v35 }
  0xbe   :  { %v331_v37 = vsub.f32 %v300_v34, %v330_v36  ;;  %v3169_v34 = vld [vmem:[%s3968_s11 + $0x30] sm:$0xff] }
  0xc0   :  { %v333_v39 = vadd.f32 %v332_v38, %v331_v37  ;;  %577 = vmatmul.bf16.vlgmr.msrb.gmra.mxu3 %v2894_v12  ;;  %v3183_v38 = vld [vmem:[%s3968_s11 + $0x28] sm:$0xff] }
  0xc1   :  { %791 = vmatpush.bf16.msra.mxu3 %v3161_v31 }
  0xc2   :  { %v334_v40 = vmax.f32 %v333_v39, 0.0  ;;  %v3189_v39 = vld [vmem:[%s3968_s11 + $0x20] sm:$0xff]  ;;  %v468_v28 = vpop.f32.mrf.mxu3 }
  0xc4   :  { %v335_v41 = vadd.f32 1e-08, %v334_v40 }
  0xc5   :  { %792 = vmatpush.bf16.msra.mxu3 %v3169_v34 }
  0xc6   :  { %2580 = vrsqrt.f32 %v335_v41  ;;  %vm343_vm2 = vcmp.eq.f32.partialorder %v335_v41, inf  ;;  %v346_v49 = vand.u32 2147483648, %v335_v41  ;;  %vm345_vm3 = vcmp.eq.f32.partialorder %v335_v41, 0.0 }
  0xc9   :  { %793 = vmatpush.bf16.msra.mxu3 %v3183_v38 }
  0xcc   :  { %v2581_v42 = vpop.eup %2580 }
  0xcd   :  { %v337_v43 = vmul.f32 %v2581_v42, %v335_v41  ;;  %794 = vmatpush.bf16.msra.mxu3 %v3189_v39 }
  0xcf   :  { %v338_v44 = vmul.f32 %v2581_v42, %v337_v43 }
  0xd1   :  { %v339_v45 = vmul.f32 0.5, %v338_v44 }
  0xd3   :  { %v340_v46 = vsub.f32 1.5, %v339_v45 }
  0xd5   :  { %v341_v47 = vmul.f32 %v2581_v42, %v340_v46  ;;  %v3195_v42 = vld [vmem:[%s3968_s11 + $0x18] sm:$0xff] }
  0xd6   :  { %795 = vmatpush.bf16.msra.mxu3 %v3195_v42 }
  0xd7   :  { %v342_v48 = vmul.f32 %v341_v47, %v335_v41  ;;  %v3201_v47 = vld [vmem:[%s3968_s11 + $0x10] sm:$0xff] }
  0xd9   :  { %v344_v50 = vsel %vm343_vm2, %v335_v41, %v342_v48 }
  0xda   :  { %v347_v51 = vsel %vm345_vm3, %v346_v49, %v344_v50  ;;  %796 = vmatpush.bf16.msra.mxu3 %v3201_v47 }
  0xdb   :  { %2260 = vmatmul.msk.f32.vlgmr.msrb.gmra.mxu1 %vm301_vm1, %v347_v51  ;;  %v3207_v51 = vld [vmem:[%s3968_s11 + $0x8] sm:$0xff] }
  0xde   :  { %797 = vmatpush.bf16.msra.mxu3 %v3207_v51 }
 0x143   :  { %v578_v29 = vpop.f32.mrf.mxu3 }
 0x158   :  { %v371_v60 = vpop.f32.mrf.mxu1 }
 0x159   :  { %vm374_vm4 = vcmp.le.f32.partialorder %v371_v60, 1e-08 }
 0x15a   :  { %v375_v61 = vsel %vm374_vm4, 1.0, %v371_v60  ;;  %v3216_v60 = vld [vmem:[%s3968_s11] sm:$0xff] }
 0x15b   :  { %2582 = vrcp.f32 %v375_v61  ;;  %798 = vmatpush.bf16.msra.mxu3 %v3216_v60 }
 0x15e   :  { %799 = vmatmul.bf16.vlgmr.msra.gmra.mxu3 %v2894_v12 }
 0x15f   :  { %934 = vmatpush.bf16.msrb.mxu3 %v3096_v59 }
 0x161   :  { %v3101_v63 = vpop.eup %2582 }
 0x162   :  { %v378_v0 = vmul.f32 %v3101_v63, %v377_v62 }
 0x163   :  { %935 = vmatpush.bf16.msrb.mxu3 %v3108_v3 }
 0x164   :  { %2262 = vmatmul.msk.f32.vlgmr.msra.gmra.mxu2 %vm301_vm1, %v378_v0 }
 0x167   :  { %936 = vmatpush.bf16.msrb.mxu3 %v3114_v6 }
 0x16b   :  { %937 = vmatpush.bf16.msrb.mxu3 %v3120_v8 }
 0x16f   :  { %938 = vmatpush.bf16.msrb.mxu3 %v3126_v10 }
 0x173   :  { %939 = vmatpush.bf16.msrb.mxu3 %v3133_v14 }
 0x177   :  { %940 = vmatpush.bf16.msrb.mxu3 %v3139_v15 }
 0x17b   :  { %941 = vmatpush.bf16.msrb.mxu3 %v3145_v16 }
 0x17f   :  { %1024 = vmatpush.bf16.msra.mxu3 %v3161_v31 }
 0x183   :  { %1025 = vmatpush.bf16.msra.mxu3 %v3169_v34 }
 0x187   :  { %1026 = vmatpush.bf16.msra.mxu3 %v3183_v38 }
 0x18b   :  { %1027 = vmatpush.bf16.msra.mxu3 %v3189_v39 }
 0x18f   :  { %1028 = vmatpush.bf16.msra.mxu3 %v3195_v42 }
 0x193   :  { %1029 = vmatpush.bf16.msra.mxu3 %v3201_v47 }
 0x197   :  { %1030 = vmatpush.bf16.msra.mxu3 %v3207_v51 }
 0x19b   :  { %1031 = vmatpush.bf16.msra.mxu3 %v3216_v60 }
 0x1e7   :  { %v405_v21 = vpop.f32.mrf.mxu2 }
 0x1e8   :  { %v406_v23 = vadd.f32 %v2578_v18, %v405_v21 }
 0x1ea   :  { %v2263_v26 = vmul.f32 -1.442695, %v406_v23 }
 0x1ec   :  { %2584 = vpow2.f32 %v2263_v26  ;;  %v3285_v26 = vld [vmem:[%s3965_s8 + $0x10] sm:$0xff] }
 0x1f2   :  { %v2585_v36 = vpop.eup %2584 }
 0x1f3   :  { %v411_v37 = vadd.f32 1.0, %v2585_v36  ;;  %v580_v36 = vpop.f32.mrf.mxu3 }
 0x1f5   :  { %2586 = vrcp.f32 %v411_v37  ;;  %v423_v44 = vand.u32 2147483648, %v411_v37  ;;  %v421_v46 = vand.u32 2147483647, %v411_v37  ;;  %vm417_vm7 = vweird.f32 %v411_v37 }
 0x1f7   :  { %v424_v49 = vor.u32 1.1754944e-38, %v423_v44  ;;  %vm422_vm9 = vcmp.eq.f32.partialorder %v421_v46, 8.507059e+37 }
 0x1fb   :  { %v2587_v40 = vpop.eup %2586  ;;  %v3318_v28 = vpop.f32.mrf.mxu3 }
 0x1fc   :  { %v413_v41 = vmul.f32 %v2587_v40, %v411_v37  ;;  %vm418_vm6 = vweird.f32 %v2587_v40  ;;  %v3298_v37 = vld [vmem:[%s3965_s8] sm:$0xff] }
 0x1fd   :  { %vm419_vm8 = vmor %vm417_vm7, %vm418_vm6 }
 0x1fe   :  { %v414_v43 = vsub.f32 1.0, %v413_v41  ;;  %v2356_v41 = vld [vmem:[#allocation14 + $0x10] sm:$0xf] }
 0x200   :  { %v415_v45 = vmul.f32 %v2587_v40, %v414_v43  ;;  %v2545_v43 = vld [vmem:[#allocation14 + $0x14] sm:$0xf0] }
 0x201   :  { %v3301_v46 = vor.u32 %v2545_v43, %v2356_v41 }
 0x202   :  { %v416_v48 = vadd.f32 %v2587_v40, %v415_v45  ;;  %v2348_v45 = vld [vmem:[#allocation14] sm:$0xf] }
 0x203   :  { %674 = vmatpush.bf16.msrb.mxu1 %v3301_v46  ;;  %v802_v43 = vpop.f32.mrf.mxu3 }
 0x204   :  { %v420_v50 = vsel %vm419_vm8, %v2587_v40, %v416_v48  ;;  %v479_v40 = vpop.f32.mrf.mxu0  ;;  %v2543_v48 = vld [vmem:[#allocation14 + $0x4] sm:$0xf0] }
 0x205   :  { %v425_v52 = vsel %vm422_vm9, %v424_v49, %v420_v50  ;;  %v2544_v49 = vld [vmem:[#allocation14 + $0x14] sm:$0xf]  ;;  %v2358_v50 = vld [vmem:[#allocation14 + $0x18] sm:$0xf0] }
 0x206   :  { %v427_v54 = vmul.f32 %v3101_v63, %v425_v52  ;;  %v3303_v52 = vor.u32 %v2544_v49, %v2358_v50  ;;  %v2366_v49 = vld [vmem:[#allocation13 + $0x8] sm:$0xf0] }
 0x208   :  { %v429_v55 = vmul.f32 %v428_v53, %v427_v54  ;;  %v430_v57 = vmul.f32 %v427_v54, %v3017_v1  ;;  %v869_v61 = vmul.f32 %v3022_v2, %v427_v54  ;;  %v1054_v62 = vmul.f32 %v3030_v4, %v427_v54  ;;  %v2542_v53 = vld [vmem:[#allocation14 + $0x4] sm:$0xf]  ;;  %687 = vmatpush.bf16.msra.mxu2 %v3303_v52 }
 0x209   :  { %v1239_v0 = vmul.f32 %v3035_v5, %v427_v54  ;;  %v1424_v33 = vmul.f32 %v3041_v7, %v427_v54  ;;  %v1609_v63 = vmul.f32 %v3047_v9, %v427_v54  ;;  %v1794_v18 = vmul.f32 %v3053_v11, %v427_v54  ;;  %v3257_v11 = vld [vmem:[%s3965_s8 + $0x30] sm:$0xff] }
 0x20a   :  { %v431_v1 = vadd.f32 %v430_v57, %v429_v55  ;;  %v3224_v19 = vadd.f32 %v869_v61, %v429_v55  ;;  %v3226_v20 = vadd.f32 %v1054_v62, %v429_v55  ;;  %v1979_v21 = vmul.f32 %v3059_v13, %v427_v54  ;;  %633 = vmatpush.bf16.msrb.mxu0 %v3257_v11  ;;  %v3264_v13 = vld [vmem:[%s3965_s8 + $0x28] sm:$0xff]  ;;  %v2541_v61 = vld [vmem:[#allocation13 + $0x14] sm:$0xf0] }
 0x20b   :  { %v3229_v23 = vadd.f32 %v1239_v0, %v429_v55  ;;  %v3231_v2 = vadd.f32 %v1424_v33, %v429_v55  ;;  %v3233_v4 = vadd.f32 %v1609_v63, %v429_v55  ;;  %v3235_v5 = vadd.f32 %v1794_v18, %v429_v55  ;;  %v2350_v54 = vld [vmem:[#allocation14 + $0x8] sm:$0xf0] }
 0x20c   :  { %v432_v7 = vpack.c.bf16 %v431_v1, %v431_v1  ;;  %v3238_v9 = vadd.f32 %v1979_v21, %v429_v55  ;;  %v481_v44 = vpop.f32.mrf.mxu0  ;;  %v2372_v55 = vld [vmem:[#allocation13 + $0x10] sm:$0xf]  ;;  %v3306_v57 = vor.u32 %v2543_v48, %v2348_v45  ;;  %v3309_v62 = vor.u32 %v2542_v53, %v2350_v54  ;;  %v2538_v45 = vld [vmem:[#allocation13 + $0x4] sm:$0xf] }
 0x20d   :  { %v3311_v0 = vor.u32 %v2541_v61, %v2372_v55  ;;  %v2539_v44 = vld [vmem:[#allocation13 + $0x4] sm:$0xf0]  ;;  %v3333_v50 = vor.u32 %v2538_v45, %v2366_v49  ;;  %v900_v54 = vld.sshfl [vmem:[#allocation1 + $0x8] sm:$0xff pattern:$0x73625140] }
 0x20e   :  { %2280 = vmatmul.msk.bf16.vlgmr.msra.gmra.mxu1 %vm301_vm1, %v432_v7  ;;  %2281 = vmatmul.msk.bf16.vlgmr.msrb.gmra.mxu2 %vm301_vm1, %v432_v7  ;;  %v899_v53 = vld.sshfl [vmem:[#allocation1] sm:$0xff pattern:$0x73625140] }
 0x20f   :  { %634 = vmatpush.bf16.msrb.mxu0 %v3264_v13  ;;  %675 = vmatpush.bf16.msrb.mxu1 %v3306_v57  ;;  %1083 = vst [vmem:[#allocation1] ss:$4 sm:$0xff] %v3148_v17  ;;  %v3371_v49 = vld [vmem:[%s3969_s12 + $0x20] sm:$0xff] }
 0x210   :  { %688 = vmatpush.bf16.msra.mxu2 %v3309_v62 }
 0x213   :  { %635 = vmatpush.bf16.msrb.mxu0 %v3271_v24  ;;  %723 = vmatpush.bf16.msra.mxu1 %v3311_v0 }
 0x217   :  { %636 = vmatpush.bf16.msrb.mxu0 %v3278_v25 }
 0x21b   :  { %637 = vmatpush.bf16.msrb.mxu0 %v3285_v26 }
 0x21e   :  { %676 = vmatmul.bf16.vlgmr.msrb.gmra.mxu1 %v2894_v12  ;;  %689 = vmatmul.bf16.vlgmr.msra.gmra.mxu2 %v2894_v12  ;;  %v2540_v12 = vld [vmem:[#allocation13 + $0x14] sm:$0xf] }
 0x21f   :  { %638 = vmatpush.bf16.msrb.mxu0 %v3292_v30 }
 0x223   :  { %639 = vmatpush.bf16.msrb.mxu0 %v3298_v37 }
 0x28b   :  { %v504_v33 = vpop.f32.mrf.mxu1 }
 0x28c   :  { %v505_v63 = vadd.f32 %v504_v33, %v466_v27  ;;  %v2374_v27 = vld [vmem:[#allocation13 + $0x18] sm:$0xf0] }
 0x28e   :  { %v582_v18 = vadd.f32 %v578_v29, %v505_v63  ;;  %v3328_v29 = vor.u32 %v2540_v12, %v2374_v27  ;;  %v3359_v27 = vld [vmem:[%s3969_s12 + $0x30] sm:$0xff] }
 0x290   :  { %v583_v1 = vpack.c.bf16 %v582_v18, %v582_v18  ;;  %736 = vmatpush.bf16.msrb.mxu2 %v3328_v29 }
 0x291   :  { %v517_v21 = vpop.f32.mrf.mxu2 }
 0x292   :  { %v518_v7 = vadd.f32 %v517_v21, %v479_v40  ;;  %640 = vmatmul.bf16.vlgmr.msrb.gmra.mxu0 %v583_v1  ;;  %942 = vmatmul.bf16.vlgmr.msrb.gmra.mxu3 %v583_v1  ;;  %v2364_v40 = vld [vmem:[#allocation13] sm:$0xf]  ;;  %v904_v21 = vsel %vm490_vm5, %v899_v53, 0 }
 0x293   :  { %v506_v36 = vpop.f32.mrf.mxu1  ;;  %1119 = vmatpush.bf16.msrb.mxu3 %v3096_v59  ;;  %v3331_v48 = vor.u32 %v2539_v44, %v2364_v40  ;;  %v3365_v40 = vld [vmem:[%s3969_s12 + $0x28] sm:$0xff]  ;;  %v3377_v53 = vld [vmem:[%s3969_s12 + $0x18] sm:$0xff] }
 0x294   :  { %737 = vmatpush.bf16.msrb.mxu2 %v3333_v50  ;;  %v906_v36 = vsel %vm490_vm5, %v900_v54, 0  ;;  %v3387_v54 = vld [vmem:[%s3969_s12 + $0x10] sm:$0xff] }
 0x295   :  { %724 = vmatpush.bf16.msra.mxu1 %v3331_v48 }
 0x297   :  { %1120 = vmatpush.bf16.msrb.mxu3 %v3108_v3 }
 0x298   :  { %891 = vmatpush.bf16.msra.mxu2 %v3152_v22 }
 0x299   :  { %v519_v41 = vpop.f32.mrf.mxu2  ;;  %878 = vmatpush.bf16.msrb.mxu1 %v3088_v56 }
 0x29b   :  { %1121 = vmatpush.bf16.msrb.mxu3 %v3114_v6  ;;  %v677_v41 = vpop.f32.mrf.mxu1 }
 0x29c   :  { %892 = vmatpush.bf16.msra.mxu2 %v3163_v32 }
 0x29d   :  { %879 = vmatpush.bf16.msrb.mxu1 %v3091_v58 }
 0x29f   :  { %1122 = vmatpush.bf16.msrb.mxu3 %v3120_v8 }
 0x2a1   :  { %v3353_v43 = vpop.f32.mrf.mxu2 }
 0x2a3   :  { %1123 = vmatpush.bf16.msrb.mxu3 %v3126_v10  ;;  %v679_v44 = vpop.f32.mrf.mxu1 }
 0x2a7   :  { %1124 = vmatpush.bf16.msrb.mxu3 %v3133_v14 }
 0x2a9   :  { %v692_v45 = vpop.f32.mrf.mxu2 }
 0x2ab   :  { %1125 = vmatpush.bf16.msrb.mxu3 %v3139_v15 }
 0x2af   :  { %1126 = vmatpush.bf16.msrb.mxu3 %v3145_v16 }
 0x30f   :  { %v641_v55 = vpop.f32.mrf.mxu0 }
 0x310   :  { %v645_v61 = vadd.f32 %v641_v55, %v518_v7  ;;  %v3351_v7 = vld [vmem:[%s3969_s12 + $0x38] sm:$0xff]  ;;  %v871_v55 = vpack.c.bf16 %v3224_v19, %v3224_v19  ;;  %v3409_v19 = vld [vmem:[%s3969_s12] sm:$0xff] }
 0x311   :  { %854 = vmatpush.bf16.msra.mxu0 %v3351_v7 }
 0x312   :  { %2588 = vtanh.f32 %v645_v61  ;;  %v3403_v61 = vld [vmem:[%s3969_s12 + $0x8] sm:$0xff] }
 0x315   :  { %v3342_v33 = vpop.f32.mrf.mxu3  ;;  %855 = vmatpush.bf16.msra.mxu0 %v3359_v27 }
 0x317   :  { %v643_v63 = vpop.f32.mrf.mxu0 }
 0x318   :  { %v2589_v18 = vpop.eup %2588 }
 0x319   :  { %v647_v1 = vpack.c.bf16 %v2589_v18, %v2589_v18  ;;  %856 = vmatpush.bf16.msra.mxu0 %v3365_v40 }
 0x31b   :  { %2378 = vmatmul.msk.bf16.vlgmr.msra.gmra.mxu1 %vm453_vm10, %v647_v1  ;;  %2379 = vmatmul.msk.bf16.vlgmr.msrb.gmra.mxu2 %vm453_vm10, %v647_v1 }
 0x31c   :  { %915 = vmatpush.bf16.msra.mxu1 %v904_v21  ;;  %928 = vmatpush.bf16.msrb.mxu2 %v906_v36 }
 0x31d   :  { %v945_v12 = vpop.f32.mrf.mxu3  ;;  %857 = vmatpush.bf16.msra.mxu0 %v3371_v49 }
 0x321   :  { %858 = vmatpush.bf16.msra.mxu0 %v3377_v53 }
 0x325   :  { %859 = vmatpush.bf16.msra.mxu0 %v3387_v54 }
 0x329   :  { %860 = vmatpush.bf16.msra.mxu0 %v3403_v61 }
 0x32b   :  { %2444 = vmatmul.msk.bf16.vlgmr.msrb.gmra.mxu1 %vm453_vm10, %v647_v1  ;;  %2445 = vmatmul.msk.bf16.vlgmr.msra.gmra.mxu2 %vm453_vm10, %v647_v1 }
 0x32c   :  { %975 = vmatpush.bf16.msrb.mxu1 %v3301_v46  ;;  %988 = vmatpush.bf16.msra.mxu2 %v3303_v52 }
 0x32d   :  { %861 = vmatpush.bf16.msra.mxu0 %v3409_v19 }
 0x330   :  { %976 = vmatpush.bf16.msrb.mxu1 %v3306_v57  ;;  %989 = vmatpush.bf16.msra.mxu2 %v3309_v62 }
 0x331   :  { %949 = vmatpush.bf16.msrb.mxu0 %v3175_v35 }
 0x335   :  { %950 = vmatpush.bf16.msrb.mxu0 %v3257_v11 }
 0x339   :  { %951 = vmatpush.bf16.msrb.mxu0 %v3264_v13 }
 0x33b   :  { %2446 = vmatmul.msk.bf16.vlgmr.msra.gmra.mxu1 %vm301_vm1, %v871_v55  ;;  %2447 = vmatmul.msk.bf16.vlgmr.msrb.gmra.mxu2 %vm301_vm1, %v871_v55 }
 0x33c   :  { %1004 = vmatpush.bf16.msra.mxu1 %v3311_v0  ;;  %1017 = vmatpush.bf16.msrb.mxu2 %v3328_v29 }
 0x33d   :  { %952 = vmatpush.bf16.msrb.mxu0 %v3271_v24 }
 0x340   :  { %1005 = vmatpush.bf16.msra.mxu1 %v3331_v48  ;;  %1018 = vmatpush.bf16.msrb.mxu2 %v3333_v50 }
 0x341   :  { %953 = vmatpush.bf16.msrb.mxu0 %v3278_v25 }
 0x345   :  { %954 = vmatpush.bf16.msrb.mxu0 %v3285_v26 }
 0x349   :  { %955 = vmatpush.bf16.msrb.mxu0 %v3292_v30 }
 0x34d   :  { %956 = vmatpush.bf16.msrb.mxu0 %v3298_v37 }
 0x398   :  { %v726_v63 = vpop.f32.mrf.mxu1 }
 0x399   :  { %v727_v18 = vadd.f32 %v726_v63, %v677_v41 }
 0x39b   :  { %v804_v1 = vadd.f32 %v3318_v28, %v727_v18 }
 0x39d   :  { %v805_v21 = vpack.c.bf16 %v804_v1, %v804_v1 }
 0x39e   :  { %v739_v36 = vpop.f32.mrf.mxu2 }
 0x39f   :  { %862 = vmatmul.bf16.vlgmr.msra.gmra.mxu0 %v805_v21  ;;  %1032 = vmatmul.bf16.vlgmr.msra.gmra.mxu3 %v805_v21 }
 0x3a0   :  { %v728_v12 = vpop.f32.mrf.mxu1  ;;  %1039 = vmatpush.bf16.msra.mxu0 %v3351_v7  ;;  %1209 = vmatpush.bf16.msra.mxu3 %v3161_v31 }
 0x3a4   :  { %1040 = vmatpush.bf16.msra.mxu0 %v3359_v27  ;;  %1210 = vmatpush.bf16.msra.mxu3 %v3169_v34 }
 0x3a6   :  { %v741_v44 = vpop.f32.mrf.mxu2 }
 0x3a8   :  { %v881_v45 = vpop.f32.mrf.mxu1  ;;  %1041 = vmatpush.bf16.msra.mxu0 %v3365_v40  ;;  %1211 = vmatpush.bf16.msra.mxu3 %v3183_v38 }
 0x3ac   :  { %1042 = vmatpush.bf16.msra.mxu0 %v3371_v49  ;;  %1212 = vmatpush.bf16.msra.mxu3 %v3189_v39 }
 0x3ae   :  { %v894_v28 = vpop.f32.mrf.mxu2 }
 0x3b0   :  { %v883_v41 = vpop.f32.mrf.mxu1  ;;  %1043 = vmatpush.bf16.msra.mxu0 %v3377_v53  ;;  %1213 = vmatpush.bf16.msra.mxu3 %v3195_v42 }
 0x3b4   :  { %1044 = vmatpush.bf16.msra.mxu0 %v3387_v54  ;;  %1214 = vmatpush.bf16.msra.mxu3 %v3201_v47 }
 0x3b6   :  { %v896_v55 = vpop.f32.mrf.mxu2 }
 0x3b8   :  { %v917_v63 = vpop.f32.mrf.mxu1  ;;  %1045 = vmatpush.bf16.msra.mxu0 %v3403_v61  ;;  %1215 = vmatpush.bf16.msra.mxu3 %v3207_v51 }
 0x3b9   :  { %v918_v18 = vadd.f32 %v917_v63, %v881_v45 }
 0x3bb   :  { %v947_v1 = vadd.f32 %v3342_v33, %v918_v18  ;;  %v740_v33 = vadd.f32 %v739_v36, %v3353_v43  ;;  %v1084_v43 = vld.sshfl [vmem:[#allocation1] sm:$0xff pattern:$0x73625140]  ;;  %v1085_v36 = vld.sshfl [vmem:[#allocation1 + $0x8] sm:$0xff pattern:$0x73625140] }
 0x3bc   :  { %1046 = vmatpush.bf16.msra.mxu0 %v3409_v19  ;;  %1216 = vmatpush.bf16.msra.mxu3 %v3216_v60  ;;  %1268 = vst [vmem:[#allocation1] ss:$4 sm:$0xff] %v3148_v17 }
 0x3bd   :  { %v948_v21 = vpack.c.bf16 %v947_v1, %v947_v1 }
 0x3be   :  { %v930_v12 = vpop.f32.mrf.mxu2 }
 0x3bf   :  { %v931_v44 = vadd.f32 %v930_v12, %v894_v28  ;;  %957 = vmatmul.bf16.vlgmr.msrb.gmra.mxu0 %v948_v21  ;;  %1127 = vmatmul.bf16.vlgmr.msrb.gmra.mxu3 %v948_v21 }
 0x3c0   :  { %v919_v41 = vpop.f32.mrf.mxu1  ;;  %1134 = vmatpush.bf16.msrb.mxu0 %v3175_v35  ;;  %1304 = vmatpush.bf16.msrb.mxu3 %v3096_v59 }
 0x3c4   :  { %1135 = vmatpush.bf16.msrb.mxu0 %v3257_v11  ;;  %1305 = vmatpush.bf16.msrb.mxu3 %v3108_v3 }
 0x3c6   :  { %v932_v45 = vpop.f32.mrf.mxu2 }
 0x3c8   :  { %1136 = vmatpush.bf16.msrb.mxu0 %v3264_v13  ;;  %1306 = vmatpush.bf16.msrb.mxu3 %v3114_v6 }
 0x3cc   :  { %1137 = vmatpush.bf16.msrb.mxu0 %v3271_v24  ;;  %1307 = vmatpush.bf16.msrb.mxu3 %v3120_v8 }
 0x3d0   :  { %1138 = vmatpush.bf16.msrb.mxu0 %v3278_v25  ;;  %1308 = vmatpush.bf16.msrb.mxu3 %v3126_v10 }
 0x3d4   :  { %1139 = vmatpush.bf16.msrb.mxu0 %v3285_v26  ;;  %1309 = vmatpush.bf16.msrb.mxu3 %v3133_v14 }
 0x3d8   :  { %1140 = vmatpush.bf16.msrb.mxu0 %v3292_v30  ;;  %1310 = vmatpush.bf16.msrb.mxu3 %v3139_v15 }
 0x3dc   :  { %1141 = vmatpush.bf16.msrb.mxu0 %v3298_v37  ;;  %1311 = vmatpush.bf16.msrb.mxu3 %v3145_v16 }
 0x41c   :  { %v863_v28 = vpop.f32.mrf.mxu0 }
 0x41d   :  { %v867_v55 = vadd.f32 %v863_v28, %v740_v33 }
 0x41f   :  { %2590 = vtanh.f32 %v867_v55 }
 0x422   :  { %v1033_v63 = vpop.f32.mrf.mxu3 }
 0x424   :  { %v865_v18 = vpop.f32.mrf.mxu0 }
 0x425   :  { %v2591_v1 = vpop.eup %2590 }
 0x426   :  { %v965_v21 = vpack.c.bf16 %v2591_v1, %v2591_v1  ;;  %v1089_v1 = vsel %vm490_vm5, %v1084_v43, 0 }
 0x428   :  { %2448 = vmatmul.msk.bf16.vlgmr.msrb.gmra.mxu1 %vm453_vm10, %v965_v21  ;;  %2449 = vmatmul.msk.bf16.vlgmr.msra.gmra.mxu2 %vm453_vm10, %v965_v21  ;;  %v1091_v21 = vsel %vm490_vm5, %v1085_v36, 0 }
 0x429   :  { %1063 = vmatpush.bf16.msrb.mxu1 %v3088_v56  ;;  %1076 = vmatpush.bf16.msra.mxu2 %v3152_v22 }
 0x42a   :  { %v1035_v12 = vpop.f32.mrf.mxu3 }
 0x42d   :  { %1064 = vmatpush.bf16.msrb.mxu1 %v3091_v58  ;;  %1077 = vmatpush.bf16.msra.mxu2 %v3163_v32 }
 0x43c   :  { %v958_v41 = vpop.f32.mrf.mxu0 }
 0x43d   :  { %v962_v45 = vadd.f32 %v958_v41, %v931_v44  ;;  %v1056_v44 = vpack.c.bf16 %v3226_v20, %v3226_v20 }
 0x43f   :  { %2592 = vtanh.f32 %v962_v45 }
 0x442   :  { %v1128_v33 = vpop.f32.mrf.mxu3 }
 0x444   :  { %v960_v28 = vpop.f32.mrf.mxu0 }
 0x445   :  { %v2593_v55 = vpop.eup %2592 }
 0x446   :  { %v964_v18 = vpack.c.bf16 %v2593_v55, %v2593_v55 }
 0x448   :  { %2450 = vmatmul.msk.bf16.vlgmr.msra.gmra.mxu1 %vm453_vm10, %v964_v18  ;;  %2451 = vmatmul.msk.bf16.vlgmr.msrb.gmra.mxu2 %vm453_vm10, %v964_v18 }
 0x449   :  { %1100 = vmatpush.bf16.msra.mxu1 %v1089_v1  ;;  %1113 = vmatpush.bf16.msrb.mxu2 %v1091_v21 }
 0x44a   :  { %v1130_v12 = vpop.f32.mrf.mxu3 }
 0x458   :  { %2452 = vmatmul.msk.bf16.vlgmr.msrb.gmra.mxu1 %vm453_vm10, %v964_v18  ;;  %2453 = vmatmul.msk.bf16.vlgmr.msra.gmra.mxu2 %vm453_vm10, %v964_v18 }
 0x459   :  { %1160 = vmatpush.bf16.msrb.mxu1 %v3301_v46  ;;  %1173 = vmatpush.bf16.msra.mxu2 %v3303_v52 }
 0x45d   :  { %1161 = vmatpush.bf16.msrb.mxu1 %v3306_v57  ;;  %1174 = vmatpush.bf16.msra.mxu2 %v3309_v62 }
 0x468   :  { %2454 = vmatmul.msk.bf16.vlgmr.msra.gmra.mxu1 %vm301_vm1, %v1056_v44  ;;  %2455 = vmatmul.msk.bf16.vlgmr.msrb.gmra.mxu2 %vm301_vm1, %v1056_v44 }
 0x469   :  { %1189 = vmatpush.bf16.msra.mxu1 %v3311_v0  ;;  %1202 = vmatpush.bf16.msrb.mxu2 %v3328_v29 }
 0x46d   :  { %1190 = vmatpush.bf16.msra.mxu1 %v3331_v48  ;;  %1203 = vmatpush.bf16.msrb.mxu2 %v3333_v50 }
 0x4a5   :  { %v978_v43 = vpop.f32.mrf.mxu1 }
 0x4ab   :  { %v991_v36 = vpop.f32.mrf.mxu2 }
 0x4ad   :  { %v980_v41 = vpop.f32.mrf.mxu1 }
 0x4b3   :  { %v993_v45 = vpop.f32.mrf.mxu2 }
 0x4c5   :  { %v1007_v28 = vpop.f32.mrf.mxu1 }
 0x4c6   :  { %v1008_v55 = vadd.f32 %v1007_v28, %v978_v43 }
 0x4c8   :  { %v1037_v18 = vadd.f32 %v1033_v63, %v1008_v55 }
 0x4ca   :  { %v1038_v20 = vpack.c.bf16 %v1037_v18, %v1037_v18 }
 0x4cb   :  { %v1020_v1 = vpop.f32.mrf.mxu2 }
 0x4cc   :  { %v1021_v21 = vadd.f32 %v1020_v1, %v991_v36  ;;  %1047 = vmatmul.bf16.vlgmr.msra.gmra.mxu0 %v1038_v20  ;;  %1217 = vmatmul.bf16.vlgmr.msra.gmra.mxu3 %v1038_v20 }
 0x4cd   :  { %v1009_v12 = vpop.f32.mrf.mxu1  ;;  %1224 = vmatpush.bf16.msra.mxu0 %v3351_v7  ;;  %1394 = vmatpush.bf16.msra.mxu3 %v3161_v31 }
 0x4d1   :  { %1225 = vmatpush.bf16.msra.mxu0 %v3359_v27  ;;  %1395 = vmatpush.bf16.msra.mxu3 %v3169_v34 }
 0x4d3   :  { %v1022_v44 = vpop.f32.mrf.mxu2 }
 0x4d5   :  { %v1066_v41 = vpop.f32.mrf.mxu1  ;;  %1226 = vmatpush.bf16.msra.mxu0 %v3365_v40  ;;  %1396 = vmatpush.bf16.msra.mxu3 %v3183_v38 }
 0x4d9   :  { %1227 = vmatpush.bf16.msra.mxu0 %v3371_v49  ;;  %1397 = vmatpush.bf16.msra.mxu3 %v3189_v39 }
 0x4db   :  { %v1079_v63 = vpop.f32.mrf.mxu2 }
 0x4dd   :  { %v1068_v43 = vpop.f32.mrf.mxu1  ;;  %1228 = vmatpush.bf16.msra.mxu0 %v3377_v53  ;;  %1398 = vmatpush.bf16.msra.mxu3 %v3195_v42 }
 0x4e1   :  { %1229 = vmatpush.bf16.msra.mxu0 %v3387_v54  ;;  %1399 = vmatpush.bf16.msra.mxu3 %v3201_v47 }
 0x4e3   :  { %v1081_v36 = vpop.f32.mrf.mxu2 }
 0x4e5   :  { %v1102_v45 = vpop.f32.mrf.mxu1  ;;  %1230 = vmatpush.bf16.msra.mxu0 %v3403_v61  ;;  %1400 = vmatpush.bf16.msra.mxu3 %v3207_v51 }
 0x4e6   :  { %v1103_v28 = vadd.f32 %v1102_v45, %v1066_v41 }
 0x4e8   :  { %v1132_v55 = vadd.f32 %v1128_v33, %v1103_v28 }
 0x4e9   :  { %1231 = vmatpush.bf16.msra.mxu0 %v3409_v19  ;;  %1401 = vmatpush.bf16.msra.mxu3 %v3216_v60 }
 0x4ea   :  { %v1133_v18 = vpack.c.bf16 %v1132_v55, %v1132_v55  ;;  %v1269_v55 = vld.sshfl [vmem:[#allocation1] sm:$0xff pattern:$0x73625140] }
 0x4eb   :  { %v1115_v20 = vpop.f32.mrf.mxu2 }
 0x4ec   :  { %v1116_v1 = vadd.f32 %v1115_v20, %v1079_v63  ;;  %1142 = vmatmul.bf16.vlgmr.msrb.gmra.mxu0 %v1133_v18  ;;  %1312 = vmatmul.bf16.vlgmr.msrb.gmra.mxu3 %v1133_v18 }
 0x4ed   :  { %v1104_v12 = vpop.f32.mrf.mxu1  ;;  %1319 = vmatpush.bf16.msrb.mxu0 %v3175_v35  ;;  %1489 = vmatpush.bf16.msrb.mxu3 %v3096_v59 }
 0x4f1   :  { %1320 = vmatpush.bf16.msrb.mxu0 %v3257_v11  ;;  %1490 = vmatpush.bf16.msrb.mxu3 %v3108_v3 }
 0x4f3   :  { %v1117_v44 = vpop.f32.mrf.mxu2 }
 0x4f5   :  { %1321 = vmatpush.bf16.msrb.mxu0 %v3264_v13  ;;  %1491 = vmatpush.bf16.msrb.mxu3 %v3114_v6 }
 0x4f9   :  { %1322 = vmatpush.bf16.msrb.mxu0 %v3271_v24  ;;  %1492 = vmatpush.bf16.msrb.mxu3 %v3120_v8 }
 0x4fd   :  { %1323 = vmatpush.bf16.msrb.mxu0 %v3278_v25  ;;  %1493 = vmatpush.bf16.msrb.mxu3 %v3126_v10 }
 0x501   :  { %1324 = vmatpush.bf16.msrb.mxu0 %v3285_v26  ;;  %1494 = vmatpush.bf16.msrb.mxu3 %v3133_v14 }
 0x505   :  { %1325 = vmatpush.bf16.msrb.mxu0 %v3292_v30  ;;  %1495 = vmatpush.bf16.msrb.mxu3 %v3139_v15 }
 0x509   :  { %1326 = vmatpush.bf16.msrb.mxu0 %v3298_v37  ;;  %1496 = vmatpush.bf16.msrb.mxu3 %v3145_v16 }
 0x549   :  { %v1048_v33 = vpop.f32.mrf.mxu0 }
 0x54a   :  { %v1052_v41 = vadd.f32 %v1048_v33, %v1021_v21  ;;  %v1270_v21 = vld.sshfl [vmem:[#allocation1 + $0x8] sm:$0xff pattern:$0x73625140] }
 0x54b   :  { %1453 = vst [vmem:[#allocation1] ss:$4 sm:$0xff] %v3148_v17 }
 0x54c   :  { %2594 = vtanh.f32 %v1052_v41 }
 0x54f   :  { %v1218_v63 = vpop.f32.mrf.mxu3 }
 0x551   :  { %v1050_v43 = vpop.f32.mrf.mxu0 }
 0x552   :  { %v2595_v36 = vpop.eup %2594  ;;  %v1274_v43 = vsel %vm490_vm5, %v1269_v55, 0 }
 0x553   :  { %v1150_v45 = vpack.c.bf16 %v2595_v36, %v2595_v36  ;;  %v1276_v36 = vsel %vm490_vm5, %v1270_v21, 0 }
 0x555   :  { %2456 = vmatmul.msk.bf16.vlgmr.msrb.gmra.mxu1 %vm453_vm10, %v1150_v45  ;;  %2457 = vmatmul.msk.bf16.vlgmr.msra.gmra.mxu2 %vm453_vm10, %v1150_v45 }
 0x556   :  { %1248 = vmatpush.bf16.msrb.mxu1 %v3088_v56  ;;  %1261 = vmatpush.bf16.msra.mxu2 %v3152_v22 }
 0x557   :  { %v1220_v28 = vpop.f32.mrf.mxu3 }
 0x55a   :  { %1249 = vmatpush.bf16.msrb.mxu1 %v3091_v58  ;;  %1262 = vmatpush.bf16.msra.mxu2 %v3163_v32 }
 0x569   :  { %v1143_v18 = vpop.f32.mrf.mxu0 }
 0x56a   :  { %v1147_v20 = vadd.f32 %v1143_v18, %v1116_v1  ;;  %v1241_v1 = vpack.c.bf16 %v3229_v23, %v3229_v23 }
 0x56c   :  { %2596 = vtanh.f32 %v1147_v20 }
 0x56f   :  { %v1313_v12 = vpop.f32.mrf.mxu3 }
 0x571   :  { %v1145_v44 = vpop.f32.mrf.mxu0 }
 0x572   :  { %v2597_v33 = vpop.eup %2596 }
 0x573   :  { %v1149_v41 = vpack.c.bf16 %v2597_v33, %v2597_v33 }
 0x575   :  { %2458 = vmatmul.msk.bf16.vlgmr.msra.gmra.mxu1 %vm453_vm10, %v1149_v41  ;;  %2459 = vmatmul.msk.bf16.vlgmr.msrb.gmra.mxu2 %vm453_vm10, %v1149_v41 }
 0x576   :  { %1285 = vmatpush.bf16.msra.mxu1 %v1274_v43  ;;  %1298 = vmatpush.bf16.msrb.mxu2 %v1276_v36 }
 0x577   :  { %v1315_v45 = vpop.f32.mrf.mxu3 }
 0x585   :  { %2460 = vmatmul.msk.bf16.vlgmr.msrb.gmra.mxu1 %vm453_vm10, %v1149_v41  ;;  %2461 = vmatmul.msk.bf16.vlgmr.msra.gmra.mxu2 %vm453_vm10, %v1149_v41 }
 0x586   :  { %1345 = vmatpush.bf16.msrb.mxu1 %v3301_v46  ;;  %1358 = vmatpush.bf16.msra.mxu2 %v3303_v52 }
 0x58a   :  { %1346 = vmatpush.bf16.msrb.mxu1 %v3306_v57  ;;  %1359 = vmatpush.bf16.msra.mxu2 %v3309_v62 }
 0x595   :  { %2462 = vmatmul.msk.bf16.vlgmr.msra.gmra.mxu1 %vm301_vm1, %v1241_v1  ;;  %2463 = vmatmul.msk.bf16.vlgmr.msrb.gmra.mxu2 %vm301_vm1, %v1241_v1 }
 0x596   :  { %1374 = vmatpush.bf16.msra.mxu1 %v3311_v0  ;;  %1387 = vmatpush.bf16.msrb.mxu2 %v3328_v29 }
 0x59a   :  { %1375 = vmatpush.bf16.msra.mxu1 %v3331_v48  ;;  %1388 = vmatpush.bf16.msrb.mxu2 %v3333_v50 }
 0x5d2   :  { %v1163_v28 = vpop.f32.mrf.mxu1 }
 0x5d8   :  { %v1176_v55 = vpop.f32.mrf.mxu2 }
 0x5da   :  { %v1165_v21 = vpop.f32.mrf.mxu1 }
 0x5e0   :  { %v1178_v18 = vpop.f32.mrf.mxu2 }
 0x5f2   :  { %v1192_v20 = vpop.f32.mrf.mxu1 }
 0x5f3   :  { %v1193_v44 = vadd.f32 %v1192_v20, %v1163_v28 }
 0x5f5   :  { %v1222_v33 = vadd.f32 %v1218_v63, %v1193_v44 }
 0x5f7   :  { %v1223_v23 = vpack.c.bf16 %v1222_v33, %v1222_v33 }
 0x5f8   :  { %v1205_v41 = vpop.f32.mrf.mxu2 }
 0x5f9   :  { %v1206_v43 = vadd.f32 %v1205_v41, %v1176_v55  ;;  %1232 = vmatmul.bf16.vlgmr.msra.gmra.mxu0 %v1223_v23  ;;  %1402 = vmatmul.bf16.vlgmr.msra.gmra.mxu3 %v1223_v23 }
 0x5fa   :  { %v1194_v36 = vpop.f32.mrf.mxu1  ;;  %1409 = vmatpush.bf16.msra.mxu0 %v3351_v7  ;;  %1579 = vmatpush.bf16.msra.mxu3 %v3161_v31 }
 0x5fb   :  { %v1426_v36 = vpack.c.bf16 %v3231_v2, %v3231_v2 }
 0x5fe   :  { %1410 = vmatpush.bf16.msra.mxu0 %v3359_v27  ;;  %1580 = vmatpush.bf16.msra.mxu3 %v3169_v34 }
 0x600   :  { %v1207_v45 = vpop.f32.mrf.mxu2 }
 0x602   :  { %v1251_v1 = vpop.f32.mrf.mxu1  ;;  %1411 = vmatpush.bf16.msra.mxu0 %v3365_v40  ;;  %1581 = vmatpush.bf16.msra.mxu3 %v3183_v38 }
 0x606   :  { %1412 = vmatpush.bf16.msra.mxu0 %v3371_v49  ;;  %1582 = vmatpush.bf16.msra.mxu3 %v3189_v39 }
 0x608   :  { %v1264_v63 = vpop.f32.mrf.mxu2 }
 0x60a   :  { %v1253_v28 = vpop.f32.mrf.mxu1  ;;  %1413 = vmatpush.bf16.msra.mxu0 %v3377_v53  ;;  %1583 = vmatpush.bf16.msra.mxu3 %v3195_v42 }
 0x60e   :  { %1414 = vmatpush.bf16.msra.mxu0 %v3387_v54  ;;  %1584 = vmatpush.bf16.msra.mxu3 %v3201_v47 }
 0x610   :  { %v1266_v31 = vpop.f32.mrf.mxu2 }
 0x612   :  { %v1287_v34 = vpop.f32.mrf.mxu1  ;;  %1415 = vmatpush.bf16.msra.mxu0 %v3403_v61  ;;  %1585 = vmatpush.bf16.msra.mxu3 %v3207_v51 }
 0x613   :  { %v1288_v38 = vadd.f32 %v1287_v34, %v1251_v1 }
 0x615   :  { %v1317_v55 = vadd.f32 %v1313_v12, %v1288_v38 }
 0x616   :  { %1416 = vmatpush.bf16.msra.mxu0 %v3409_v19  ;;  %1586 = vmatpush.bf16.msra.mxu3 %v3216_v60 }
 0x617   :  { %v1318_v39 = vpack.c.bf16 %v1317_v55, %v1317_v55 }
 0x618   :  { %v1300_v21 = vpop.f32.mrf.mxu2 }
 0x619   :  { %v1301_v18 = vadd.f32 %v1300_v21, %v1264_v63  ;;  %1327 = vmatmul.bf16.vlgmr.msrb.gmra.mxu0 %v1318_v39  ;;  %1497 = vmatmul.bf16.vlgmr.msrb.gmra.mxu3 %v1318_v39 }
 0x61a   :  { %v1289_v42 = vpop.f32.mrf.mxu1  ;;  %1504 = vmatpush.bf16.msrb.mxu0 %v3175_v35  ;;  %1674 = vmatpush.bf16.msrb.mxu3 %v3096_v59 }
 0x61b   :  { %v3609_v42 = vld [vmem:[%s3968_s11 + $0x30] sm:$0xff] }
 0x61e   :  { %1505 = vmatpush.bf16.msrb.mxu0 %v3257_v11  ;;  %1675 = vmatpush.bf16.msrb.mxu3 %v3108_v3 }
 0x620   :  { %v1302_v47 = vpop.f32.mrf.mxu2 }
 0x622   :  { %1506 = vmatpush.bf16.msrb.mxu0 %v3264_v13  ;;  %1676 = vmatpush.bf16.msrb.mxu3 %v3114_v6 }
 0x626   :  { %1507 = vmatpush.bf16.msrb.mxu0 %v3271_v24  ;;  %1677 = vmatpush.bf16.msrb.mxu3 %v3120_v8 }
 0x62a   :  { %1508 = vmatpush.bf16.msrb.mxu0 %v3278_v25  ;;  %1678 = vmatpush.bf16.msrb.mxu3 %v3126_v10 }
 0x62e   :  { %1509 = vmatpush.bf16.msrb.mxu0 %v3285_v26  ;;  %1679 = vmatpush.bf16.msrb.mxu3 %v3133_v14  ;;  %v1454_v14 = vld.sshfl [vmem:[#allocation1] sm:$0xff pattern:$0x73625140] }
 0x62f   :  { %v1459_v23 = vsel %vm490_vm5, %v1454_v14, 0 }
 0x632   :  { %1510 = vmatpush.bf16.msrb.mxu0 %v3292_v30  ;;  %1680 = vmatpush.bf16.msrb.mxu3 %v3139_v15  ;;  %v1455_v15 = vld.sshfl [vmem:[#allocation1 + $0x8] sm:$0xff pattern:$0x73625140] }
 0x633   :  { %1638 = vst [vmem:[#allocation1] ss:$4 sm:$0xff] %v3148_v17  ;;  %v1461_v41 = vsel %vm490_vm5, %v1455_v15, 0 }
 0x636   :  { %1511 = vmatpush.bf16.msrb.mxu0 %v3298_v37  ;;  %1681 = vmatpush.bf16.msrb.mxu3 %v3145_v16 }
 0x676   :  { %v1233_v59 = vpop.f32.mrf.mxu0 }
 0x677   :  { %v1237_v3 = vadd.f32 %v1233_v59, %v1206_v43 }
 0x679   :  { %2598 = vtanh.f32 %v1237_v3  ;;  %v3616_v3 = vld [vmem:[%s3968_s11 + $0x28] sm:$0xff] }
 0x67c   :  { %v1403_v6 = vpop.f32.mrf.mxu3 }
 0x67e   :  { %v1235_v8 = vpop.f32.mrf.mxu0 }
 0x67f   :  { %v2599_v35 = vpop.eup %2598 }
 0x680   :  { %v1335_v51 = vpack.c.bf16 %v2599_v35, %v2599_v35 }
 0x682   :  { %2464 = vmatmul.msk.bf16.vlgmr.msrb.gmra.mxu1 %vm453_vm10, %v1335_v51  ;;  %2465 = vmatmul.msk.bf16.vlgmr.msra.gmra.mxu2 %vm453_vm10, %v1335_v51  ;;  %v3630_v51 = vld [vmem:[%s3968_s11 + $0x18] sm:$0xff] }
 0x683   :  { %1433 = vmatpush.bf16.msrb.mxu1 %v3088_v56  ;;  %1446 = vmatpush.bf16.msra.mxu2 %v3152_v22 }
 0x684   :  { %v1405_v10 = vpop.f32.mrf.mxu3 }
 0x685   :  { %v3637_v10 = vld [vmem:[%s3968_s11 + $0x10] sm:$0xff] }
 0x687   :  { %1434 = vmatpush.bf16.msrb.mxu1 %v3091_v58  ;;  %1447 = vmatpush.bf16.msra.mxu2 %v3163_v32 }
 0x696   :  { %v1328_v16 = vpop.f32.mrf.mxu0 }
 0x697   :  { %v1332_v60 = vadd.f32 %v1328_v16, %v1301_v18  ;;  %v3602_v18 = vld [vmem:[%s3968_s11 + $0x38] sm:$0xff]  ;;  %v3644_v16 = vld [vmem:[%s3968_s11 + $0x8] sm:$0xff] }
 0x699   :  { %2600 = vtanh.f32 %v1332_v60 }
 0x69c   :  { %v3576_v12 = vpop.f32.mrf.mxu3 }
 0x69e   :  { %v1330_v20 = vpop.f32.mrf.mxu0 }
 0x69f   :  { %v2601_v44 = vpop.eup %2600 }
 0x6a0   :  { %v1334_v33 = vpack.c.bf16 %v2601_v44, %v2601_v44  ;;  %v3652_v44 = vld [vmem:[%s3968_s11] sm:$0xff] }
 0x6a2   :  { %2466 = vmatmul.msk.bf16.vlgmr.msra.gmra.mxu1 %vm453_vm10, %v1334_v33  ;;  %2467 = vmatmul.msk.bf16.vlgmr.msrb.gmra.mxu2 %vm453_vm10, %v1334_v33 }
 0x6a3   :  { %1470 = vmatpush.bf16.msra.mxu1 %v1459_v23  ;;  %1483 = vmatpush.bf16.msrb.mxu2 %v1461_v41 }
 0x6a4   :  { %v1500_v43 = vpop.f32.mrf.mxu3 }
 0x6b2   :  { %2468 = vmatmul.msk.bf16.vlgmr.msrb.gmra.mxu1 %vm453_vm10, %v1334_v33  ;;  %2469 = vmatmul.msk.bf16.vlgmr.msra.gmra.mxu2 %vm453_vm10, %v1334_v33 }
 0x6b3   :  { %1530 = vmatpush.bf16.msrb.mxu1 %v3301_v46  ;;  %1543 = vmatpush.bf16.msra.mxu2 %v3303_v52 }
 0x6b7   :  { %1531 = vmatpush.bf16.msrb.mxu1 %v3306_v57  ;;  %1544 = vmatpush.bf16.msra.mxu2 %v3309_v62 }
 0x6c2   :  { %2470 = vmatmul.msk.bf16.vlgmr.msra.gmra.mxu1 %vm301_vm1, %v1426_v36  ;;  %2471 = vmatmul.msk.bf16.vlgmr.msrb.gmra.mxu2 %vm301_vm1, %v1426_v36  ;;  %v3658_v36 = vld [vmem:[%s3965_s8 + $0x38] sm:$0xff] }
 0x6c3   :  { %1559 = vmatpush.bf16.msra.mxu1 %v3311_v0  ;;  %1572 = vmatpush.bf16.msrb.mxu2 %v3328_v29 }
 0x6c7   :  { %1560 = vmatpush.bf16.msra.mxu1 %v3331_v48  ;;  %1573 = vmatpush.bf16.msrb.mxu2 %v3333_v50 }
 0x6ff   :  { %v1348_v45 = vpop.f32.mrf.mxu1 }
 0x705   :  { %v1361_v1 = vpop.f32.mrf.mxu2 }
 0x707   :  { %v1350_v63 = vpop.f32.mrf.mxu1 }
 0x708   :  { %v3678_v63 = vld [vmem:[%s3964_s7 + $0x28] sm:$0xff] }
 0x70d   :  { %v1363_v28 = vpop.f32.mrf.mxu2 }
 0x71f   :  { %v1377_v31 = vpop.f32.mrf.mxu1 }
 0x720   :  { %v1378_v34 = vadd.f32 %v1377_v31, %v1348_v45  ;;  %v3671_v45 = vld [vmem:[%s3964_s7 + $0x30] sm:$0xff] }
 0x722   :  { %v1407_v38 = vadd.f32 %v1403_v6, %v1378_v34  ;;  %v3623_v6 = vld [vmem:[%s3968_s11 + $0x20] sm:$0xff] }
 0x724   :  { %v1408_v2 = vpack.c.bf16 %v1407_v38, %v1407_v38 }
 0x725   :  { %v1390_v55 = vpop.f32.mrf.mxu2 }
 0x726   :  { %v3596_v39 = vadd.f32 %v1390_v55, %v1361_v1  ;;  %1417 = vmatmul.bf16.vlgmr.msra.gmra.mxu0 %v1408_v2  ;;  %1587 = vmatmul.bf16.vlgmr.msra.gmra.mxu3 %v1408_v2  ;;  %v1639_v55 = vld.sshfl [vmem:[#allocation1] sm:$0xff pattern:$0x73625140] }
 0x727   :  { %v1379_v21 = vpop.f32.mrf.mxu1  ;;  %1594 = vmatpush.bf16.msra.mxu0 %v3351_v7  ;;  %1764 = vmatpush.bf16.msra.mxu3 %v3602_v18 }
 0x72b   :  { %1595 = vmatpush.bf16.msra.mxu0 %v3359_v27  ;;  %1765 = vmatpush.bf16.msra.mxu3 %v3609_v42 }
 0x72d   :  { %v1392_v47 = vpop.f32.mrf.mxu2 }
 0x72f   :  { %v1436_v59 = vpop.f32.mrf.mxu1  ;;  %1596 = vmatpush.bf16.msra.mxu0 %v3365_v40  ;;  %1766 = vmatpush.bf16.msra.mxu3 %v3616_v3 }
 0x733   :  { %1597 = vmatpush.bf16.msra.mxu0 %v3371_v49  ;;  %1767 = vmatpush.bf16.msra.mxu3 %v3623_v6 }
 0x735   :  { %v1449_v8 = vpop.f32.mrf.mxu2 }
 0x737   :  { %v1438_v35 = vpop.f32.mrf.mxu1  ;;  %1598 = vmatpush.bf16.msra.mxu0 %v3377_v53  ;;  %1768 = vmatpush.bf16.msra.mxu3 %v3630_v51 }
 0x73b   :  { %1599 = vmatpush.bf16.msra.mxu0 %v3387_v54  ;;  %1769 = vmatpush.bf16.msra.mxu3 %v3637_v10 }
 0x73d   :  { %v1451_v14 = vpop.f32.mrf.mxu2 }
 0x73f   :  { %v1472_v15 = vpop.f32.mrf.mxu1  ;;  %1600 = vmatpush.bf16.msra.mxu0 %v3403_v61  ;;  %1770 = vmatpush.bf16.msra.mxu3 %v3644_v16 }
 0x740   :  { %v1473_v60 = vadd.f32 %v1472_v15, %v1436_v59  ;;  %v1644_v15 = vsel %vm490_vm5, %v1639_v55, 0 }
 0x742   :  { %v1502_v20 = vadd.f32 %v3576_v12, %v1473_v60  ;;  %v3664_v12 = vld [vmem:[%s3964_s7 + $0x38] sm:$0xff] }
 0x743   :  { %1601 = vmatpush.bf16.msra.mxu0 %v3409_v19  ;;  %1771 = vmatpush.bf16.msra.mxu3 %v3652_v44 }
 0x744   :  { %v1503_v33 = vpack.c.bf16 %v1502_v20, %v1502_v20 }
 0x745   :  { %v1485_v23 = vpop.f32.mrf.mxu2 }
 0x746   :  { %v1486_v41 = vadd.f32 %v1485_v23, %v1449_v8  ;;  %1512 = vmatmul.bf16.vlgmr.msrb.gmra.mxu0 %v1503_v33  ;;  %1682 = vmatmul.bf16.vlgmr.msrb.gmra.mxu3 %v1503_v33  ;;  %v1611_v33 = vpack.c.bf16 %v3233_v4, %v3233_v4 }
 0x747   :  { %v1474_v43 = vpop.f32.mrf.mxu1  ;;  %1689 = vmatpush.bf16.msrb.mxu0 %v3658_v36  ;;  %1859 = vmatpush.bf16.msrb.mxu3 %v3664_v12 }
 0x74b   :  { %1690 = vmatpush.bf16.msrb.mxu0 %v3257_v11  ;;  %1860 = vmatpush.bf16.msrb.mxu3 %v3671_v45  ;;  %v3685_v11 = vld [vmem:[%s3964_s7 + $0x20] sm:$0xff] }
 0x74d   :  { %v1487_v1 = vpop.f32.mrf.mxu2 }
 0x74f   :  { %1691 = vmatpush.bf16.msrb.mxu0 %v3264_v13  ;;  %1861 = vmatpush.bf16.msrb.mxu3 %v3678_v63  ;;  %v3692_v13 = vld [vmem:[%s3964_s7 + $0x18] sm:$0xff] }
 0x753   :  { %1692 = vmatpush.bf16.msrb.mxu0 %v3271_v24  ;;  %1862 = vmatpush.bf16.msrb.mxu3 %v3685_v11  ;;  %v3699_v24 = vld [vmem:[%s3964_s7 + $0x10] sm:$0xff] }
 0x757   :  { %1693 = vmatpush.bf16.msrb.mxu0 %v3278_v25  ;;  %1863 = vmatpush.bf16.msrb.mxu3 %v3692_v13  ;;  %v3706_v25 = vld [vmem:[%s3964_s7 + $0x8] sm:$0xff] }
 0x75b   :  { %1694 = vmatpush.bf16.msrb.mxu0 %v3285_v26  ;;  %1864 = vmatpush.bf16.msrb.mxu3 %v3699_v24  ;;  %v3713_v26 = vld [vmem:[%s3964_s7] sm:$0xff] }
 0x75f   :  { %1695 = vmatpush.bf16.msrb.mxu0 %v3292_v30  ;;  %1865 = vmatpush.bf16.msrb.mxu3 %v3706_v25 }
 0x763   :  { %1696 = vmatpush.bf16.msrb.mxu0 %v3298_v37  ;;  %1866 = vmatpush.bf16.msrb.mxu3 %v3713_v26 }
 0x7a3   :  { %v1418_v28 = vpop.f32.mrf.mxu0 }
 0x7a4   :  { %v1422_v31 = vadd.f32 %v1418_v28, %v3596_v39  ;;  %v1640_v39 = vld.sshfl [vmem:[#allocation1 + $0x8] sm:$0xff pattern:$0x73625140] }
 0x7a5   :  { %1823 = vst [vmem:[#allocation1] ss:$4 sm:$0xff] %v3148_v17  ;;  %v1646_v60 = vsel %vm490_vm5, %v1640_v39, 0 }
 0x7a6   :  { %2602 = vtanh.f32 %v1422_v31 }
 0x7a9   :  { %v1588_v30 = vpop.f32.mrf.mxu3 }
 0x7ab   :  { %v1420_v34 = vpop.f32.mrf.mxu0 }
 0x7ac   :  { %v2603_v38 = vpop.eup %2602 }
 0x7ad   :  { %v1520_v2 = vpack.c.bf16 %v2603_v38, %v2603_v38 }
 0x7af   :  { %2472 = vmatmul.msk.bf16.vlgmr.msrb.gmra.mxu1 %vm453_vm10, %v1520_v2  ;;  %2473 = vmatmul.msk.bf16.vlgmr.msra.gmra.mxu2 %vm453_vm10, %v1520_v2 }
 0x7b0   :  { %1618 = vmatpush.bf16.msrb.mxu1 %v3088_v56  ;;  %1631 = vmatpush.bf16.msra.mxu2 %v3152_v22 }
 0x7b1   :  { %v1590_v37 = vpop.f32.mrf.mxu3 }
 0x7b4   :  { %1619 = vmatpush.bf16.msrb.mxu1 %v3091_v58  ;;  %1632 = vmatpush.bf16.msra.mxu2 %v3163_v32 }
 0x7c3   :  { %v1513_v21 = vpop.f32.mrf.mxu0 }
 0x7c4   :  { %v1517_v47 = vadd.f32 %v1513_v21, %v1486_v41 }
 0x7c6   :  { %2604 = vtanh.f32 %v1517_v47 }
 0x7c9   :  { %v1683_v59 = vpop.f32.mrf.mxu3 }
 0x7cb   :  { %v1515_v8 = vpop.f32.mrf.mxu0 }
 0x7cc   :  { %v2605_v35 = vpop.eup %2604 }
 0x7cd   :  { %v1519_v14 = vpack.c.bf16 %v2605_v35, %v2605_v35 }
 0x7cf   :  { %2474 = vmatmul.msk.bf16.vlgmr.msra.gmra.mxu1 %vm453_vm10, %v1519_v14  ;;  %2475 = vmatmul.msk.bf16.vlgmr.msrb.gmra.mxu2 %vm453_vm10, %v1519_v14 }
 0x7d0   :  { %1655 = vmatpush.bf16.msra.mxu1 %v1644_v15  ;;  %1668 = vmatpush.bf16.msrb.mxu2 %v1646_v60 }
 0x7d1   :  { %v1685_v20 = vpop.f32.mrf.mxu3 }
 0x7df   :  { %2476 = vmatmul.msk.bf16.vlgmr.msrb.gmra.mxu1 %vm453_vm10, %v1519_v14  ;;  %2477 = vmatmul.msk.bf16.vlgmr.msra.gmra.mxu2 %vm453_vm10, %v1519_v14 }
 0x7e0   :  { %1715 = vmatpush.bf16.msrb.mxu1 %v3301_v46  ;;  %1728 = vmatpush.bf16.msra.mxu2 %v3303_v52 }
 0x7e4   :  { %1716 = vmatpush.bf16.msrb.mxu1 %v3306_v57  ;;  %1729 = vmatpush.bf16.msra.mxu2 %v3309_v62 }
 0x7ef   :  { %2478 = vmatmul.msk.bf16.vlgmr.msra.gmra.mxu1 %vm301_vm1, %v1611_v33  ;;  %2479 = vmatmul.msk.bf16.vlgmr.msrb.gmra.mxu2 %vm301_vm1, %v1611_v33  ;;  %v1825_v33 = vld.sshfl [vmem:[#allocation1 + $0x8] sm:$0xff pattern:$0x73625140] }
 0x7f0   :  { %1744 = vmatpush.bf16.msra.mxu1 %v3311_v0  ;;  %1757 = vmatpush.bf16.msrb.mxu2 %v3328_v29 }
 0x7f4   :  { %1745 = vmatpush.bf16.msra.mxu1 %v3331_v48  ;;  %1758 = vmatpush.bf16.msrb.mxu2 %v3333_v50 }
 0x82c   :  { %v1533_v23 = vpop.f32.mrf.mxu1 }
 0x832   :  { %v1546_v41 = vpop.f32.mrf.mxu2 }
 0x834   :  { %v1535_v43 = vpop.f32.mrf.mxu1 }
 0x83a   :  { %v1548_v1 = vpop.f32.mrf.mxu2 }
 0x84c   :  { %v1562_v28 = vpop.f32.mrf.mxu1 }
 0x84d   :  { %v1563_v31 = vadd.f32 %v1562_v28, %v1533_v23 }
 0x84f   :  { %v1592_v34 = vadd.f32 %v1588_v30, %v1563_v31 }
 0x851   :  { %v1593_v4 = vpack.c.bf16 %v1592_v34, %v1592_v34 }
 0x852   :  { %v1575_v38 = vpop.f32.mrf.mxu2 }
 0x853   :  { %v1576_v2 = vadd.f32 %v1575_v38, %v1546_v41  ;;  %1602 = vmatmul.bf16.vlgmr.msra.gmra.mxu0 %v1593_v4  ;;  %1772 = vmatmul.bf16.vlgmr.msra.gmra.mxu3 %v1593_v4  ;;  %v1831_v4 = vsel %vm490_vm5, %v1825_v33, 0 }
 0x854   :  { %v1564_v37 = vpop.f32.mrf.mxu1  ;;  %1779 = vmatpush.bf16.msra.mxu0 %v3351_v7  ;;  %1949 = vmatpush.bf16.msra.mxu3 %v3602_v18 }
 0x858   :  { %1780 = vmatpush.bf16.msra.mxu0 %v3359_v27  ;;  %1950 = vmatpush.bf16.msra.mxu3 %v3609_v42 }
 0x85a   :  { %v1577_v55 = vpop.f32.mrf.mxu2 }
 0x85c   :  { %v1621_v39 = vpop.f32.mrf.mxu1  ;;  %1781 = vmatpush.bf16.msra.mxu0 %v3365_v40  ;;  %1951 = vmatpush.bf16.msra.mxu3 %v3616_v3 }
 0x860   :  { %1782 = vmatpush.bf16.msra.mxu0 %v3371_v49  ;;  %1952 = vmatpush.bf16.msra.mxu3 %v3623_v6 }
 0x862   :  { %v1634_v30 = vpop.f32.mrf.mxu2 }
 0x864   :  { %v1623_v21 = vpop.f32.mrf.mxu1  ;;  %1783 = vmatpush.bf16.msra.mxu0 %v3377_v53  ;;  %1953 = vmatpush.bf16.msra.mxu3 %v3630_v51 }
 0x868   :  { %1784 = vmatpush.bf16.msra.mxu0 %v3387_v54  ;;  %1954 = vmatpush.bf16.msra.mxu3 %v3637_v10 }
 0x86a   :  { %v1636_v7 = vpop.f32.mrf.mxu2 }
 0x86c   :  { %v1657_v27 = vpop.f32.mrf.mxu1  ;;  %1785 = vmatpush.bf16.msra.mxu0 %v3403_v61  ;;  %1955 = vmatpush.bf16.msra.mxu3 %v3644_v16  ;;  %v3763_v61 = vld [vmem:[%s3965_s8 + $0x30] sm:$0xff] }
 0x86d   :  { %v1658_v40 = vadd.f32 %v1657_v27, %v1621_v39 }
 0x86f   :  { %v1687_v49 = vadd.f32 %v1683_v59, %v1658_v40  ;;  %v3770_v59 = vld [vmem:[%s3965_s8 + $0x28] sm:$0xff] }
 0x870   :  { %1786 = vmatpush.bf16.msra.mxu0 %v3409_v19  ;;  %1956 = vmatpush.bf16.msra.mxu3 %v3652_v44 }
 0x871   :  { %v1688_v47 = vpack.c.bf16 %v1687_v49, %v1687_v49 }
 0x872   :  { %v1670_v53 = vpop.f32.mrf.mxu2 }
 0x873   :  { %v1671_v8 = vadd.f32 %v1670_v53, %v1634_v30  ;;  %1697 = vmatmul.bf16.vlgmr.msrb.gmra.mxu0 %v1688_v47  ;;  %1867 = vmatmul.bf16.vlgmr.msrb.gmra.mxu3 %v1688_v47  ;;  %v3839_v47 = vld [vmem:[%s3969_s12 + $0x38] sm:$0xff]  ;;  %v3846_v53 = vld [vmem:[%s3969_s12 + $0x30] sm:$0xff] }
 0x874   :  { %v1659_v54 = vpop.f32.mrf.mxu1  ;;  %1874 = vmatpush.bf16.msrb.mxu0 %v3658_v36  ;;  %2044 = vmatpush.bf16.msrb.mxu3 %v3664_v12  ;;  %v3777_v12 = vld [vmem:[%s3965_s8 + $0x20] sm:$0xff] }
 0x878   :  { %1875 = vmatpush.bf16.msrb.mxu0 %v3763_v61  ;;  %2045 = vmatpush.bf16.msrb.mxu3 %v3671_v45  ;;  %v3784_v45 = vld [vmem:[%s3965_s8 + $0x18] sm:$0xff] }
 0x87a   :  { %v1672_v19 = vpop.f32.mrf.mxu2 }
 0x87b   :  { %v3853_v19 = vld [vmem:[%s3969_s12 + $0x28] sm:$0xff] }
 0x87c   :  { %1876 = vmatpush.bf16.msrb.mxu0 %v3770_v59  ;;  %2046 = vmatpush.bf16.msrb.mxu3 %v3678_v63  ;;  %v3791_v63 = vld [vmem:[%s3965_s8 + $0x10] sm:$0xff] }
 0x880   :  { %1877 = vmatpush.bf16.msrb.mxu0 %v3777_v12  ;;  %2047 = vmatpush.bf16.msrb.mxu3 %v3685_v11  ;;  %v3798_v11 = vld [vmem:[%s3965_s8 + $0x8] sm:$0xff] }
 0x884   :  { %1878 = vmatpush.bf16.msrb.mxu0 %v3784_v45  ;;  %2048 = vmatpush.bf16.msrb.mxu3 %v3692_v13  ;;  %v3805_v13 = vld [vmem:[%s3965_s8] sm:$0xff] }
 0x888   :  { %1879 = vmatpush.bf16.msrb.mxu0 %v3791_v63  ;;  %2049 = vmatpush.bf16.msrb.mxu3 %v3699_v24 }
 0x88c   :  { %1880 = vmatpush.bf16.msrb.mxu0 %v3798_v11  ;;  %2050 = vmatpush.bf16.msrb.mxu3 %v3706_v25 }
 0x890   :  { %1881 = vmatpush.bf16.msrb.mxu0 %v3805_v13  ;;  %2051 = vmatpush.bf16.msrb.mxu3 %v3713_v26  ;;  %v1824_v26 = vld.sshfl [vmem:[#allocation1] sm:$0xff pattern:$0x73625140] }
 0x891   :  { %2008 = vst [vmem:[#allocation1] ss:$4 sm:$0xff] %v3148_v17  ;;  %v1829_v34 = vsel %vm490_vm5, %v1824_v26, 0  ;;  %v1796_v17 = vpack.c.bf16 %v3235_v5, %v3235_v5 }
 0x8d0   :  { %v1603_v35 = vpop.f32.mrf.mxu0 }
 0x8d1   :  { %v1607_v24 = vadd.f32 %v1603_v35, %v1576_v2 }
 0x8d3   :  { %2606 = vtanh.f32 %v1607_v24  ;;  %v3867_v24 = vld [vmem:[%s3969_s12 + $0x18] sm:$0xff] }
 0x8d6   :  { %v1773_v14 = vpop.f32.mrf.mxu3 }
 0x8d8   :  { %v1605_v15 = vpop.f32.mrf.mxu0 }
 0x8d9   :  { %v2607_v60 = vpop.eup %2606  ;;  %v3881_v15 = vld [vmem:[%s3969_s12 + $0x8] sm:$0xff] }
 0x8da   :  { %v1705_v20 = vpack.c.bf16 %v2607_v60, %v2607_v60 }
 0x8dc   :  { %2480 = vmatmul.msk.bf16.vlgmr.msrb.gmra.mxu1 %vm453_vm10, %v1705_v20  ;;  %2481 = vmatmul.msk.bf16.vlgmr.msra.gmra.mxu2 %vm453_vm10, %v1705_v20  ;;  %v3889_v20 = vld [vmem:[%s3969_s12] sm:$0xff] }
 0x8dd   :  { %1803 = vmatpush.bf16.msrb.mxu1 %v3088_v56  ;;  %1816 = vmatpush.bf16.msra.mxu2 %v3152_v22 }
 0x8de   :  { %v1775_v25 = vpop.f32.mrf.mxu3 }
 0x8e1   :  { %1804 = vmatpush.bf16.msrb.mxu1 %v3091_v58  ;;  %1817 = vmatpush.bf16.msra.mxu2 %v3163_v32 }
 0x8f0   :  { %v1698_v23 = vpop.f32.mrf.mxu0 }
 0x8f1   :  { %v1702_v41 = vadd.f32 %v1698_v23, %v1671_v8 }
 0x8f3   :  { %2608 = vtanh.f32 %v1702_v41 }
 0x8f6   :  { %v3816_v43 = vpop.f32.mrf.mxu3 }
 0x8f8   :  { %v1700_v1 = vpop.f32.mrf.mxu0 }
 0x8f9   :  { %v2609_v28 = vpop.eup %2608 }
 0x8fa   :  { %v1704_v31 = vpack.c.bf16 %v2609_v28, %v2609_v28 }
 0x8fc   :  { %2482 = vmatmul.msk.bf16.vlgmr.msra.gmra.mxu1 %vm453_vm10, %v1704_v31  ;;  %2483 = vmatmul.msk.bf16.vlgmr.msrb.gmra.mxu2 %vm453_vm10, %v1704_v31 }
 0x8fd   :  { %1840 = vmatpush.bf16.msra.mxu1 %v1829_v34  ;;  %1853 = vmatpush.bf16.msrb.mxu2 %v1831_v4 }
 0x8fe   :  { %v1870_v38 = vpop.f32.mrf.mxu3 }
 0x90c   :  { %2484 = vmatmul.msk.bf16.vlgmr.msrb.gmra.mxu1 %vm453_vm10, %v1704_v31  ;;  %2485 = vmatmul.msk.bf16.vlgmr.msra.gmra.mxu2 %vm453_vm10, %v1704_v31 }
 0x90d   :  { %1900 = vmatpush.bf16.msrb.mxu1 %v3301_v46  ;;  %1913 = vmatpush.bf16.msra.mxu2 %v3303_v52 }
 0x911   :  { %1901 = vmatpush.bf16.msrb.mxu1 %v3306_v57  ;;  %1914 = vmatpush.bf16.msra.mxu2 %v3309_v62 }
 0x91c   :  { %2486 = vmatmul.msk.bf16.vlgmr.msra.gmra.mxu1 %vm301_vm1, %v1796_v17  ;;  %2487 = vmatmul.msk.bf16.vlgmr.msrb.gmra.mxu2 %vm301_vm1, %v1796_v17 }
 0x91d   :  { %1929 = vmatpush.bf16.msra.mxu1 %v3311_v0  ;;  %1942 = vmatpush.bf16.msrb.mxu2 %v3328_v29 }
 0x921   :  { %1930 = vmatpush.bf16.msra.mxu1 %v3331_v48  ;;  %1943 = vmatpush.bf16.msrb.mxu2 %v3333_v50 }
 0x959   :  { %v1718_v2 = vpop.f32.mrf.mxu1 }
 0x95f   :  { %v1731_v37 = vpop.f32.mrf.mxu2 }
 0x961   :  { %v1720_v55 = vpop.f32.mrf.mxu1 }
 0x967   :  { %v1733_v39 = vpop.f32.mrf.mxu2 }
 0x979   :  { %v1747_v30 = vpop.f32.mrf.mxu1 }
 0x97a   :  { %v1748_v21 = vadd.f32 %v1747_v30, %v1718_v2 }
 0x97c   :  { %v1777_v7 = vadd.f32 %v1773_v14, %v1748_v21 }
 0x97e   :  { %v1778_v5 = vpack.c.bf16 %v1777_v7, %v1777_v7 }
 0x97f   :  { %v1760_v27 = vpop.f32.mrf.mxu2 }
 0x980   :  { %v1761_v40 = vadd.f32 %v1760_v27, %v1731_v37  ;;  %1787 = vmatmul.bf16.vlgmr.msra.gmra.mxu0 %v1778_v5  ;;  %1957 = vmatmul.bf16.vlgmr.msra.gmra.mxu3 %v1778_v5 }
 0x981   :  { %v1749_v49 = vpop.f32.mrf.mxu1  ;;  %1964 = vmatpush.bf16.msra.mxu0 %v3839_v47  ;;  %2134 = vmatpush.bf16.msra.mxu3 %v3602_v18  ;;  %v3860_v18 = vld [vmem:[%s3969_s12 + $0x20] sm:$0xff] }
 0x985   :  { %1965 = vmatpush.bf16.msra.mxu0 %v3846_v53  ;;  %2135 = vmatpush.bf16.msra.mxu3 %v3609_v42 }
 0x987   :  { %v1762_v8 = vpop.f32.mrf.mxu2 }
 0x989   :  { %v1806_v54 = vpop.f32.mrf.mxu1  ;;  %1966 = vmatpush.bf16.msra.mxu0 %v3853_v19  ;;  %2136 = vmatpush.bf16.msra.mxu3 %v3616_v3  ;;  %v3874_v3 = vld [vmem:[%s3969_s12 + $0x10] sm:$0xff] }
 0x98d   :  { %1967 = vmatpush.bf16.msra.mxu0 %v3860_v18  ;;  %2137 = vmatpush.bf16.msra.mxu3 %v3623_v6 }
 0x98f   :  { %v1819_v42 = vpop.f32.mrf.mxu2 }
 0x991   :  { %v1808_v35 = vpop.f32.mrf.mxu1  ;;  %1968 = vmatpush.bf16.msra.mxu0 %v3867_v24  ;;  %2138 = vmatpush.bf16.msra.mxu3 %v3630_v51 }
 0x992   :  { %v2563_v35 = vld [vmem:[%s3970_s13 + $0x8] sm:$0xff] }
 0x995   :  { %1969 = vmatpush.bf16.msra.mxu0 %v3874_v3  ;;  %2139 = vmatpush.bf16.msra.mxu3 %v3637_v10 }
 0x997   :  { %v1821_v6 = vpop.f32.mrf.mxu2 }
 0x999   :  { %v1842_v14 = vpop.f32.mrf.mxu1  ;;  %1970 = vmatpush.bf16.msra.mxu0 %v3881_v15  ;;  %2140 = vmatpush.bf16.msra.mxu3 %v3644_v16 }
 0x99a   :  { %v1843_v51 = vadd.f32 %v1842_v14, %v1806_v54 }
 0x99c   :  { %v1872_v60 = vadd.f32 %v3816_v43, %v1843_v51 }
 0x99d   :  { %1971 = vmatpush.bf16.msra.mxu0 %v3889_v20  ;;  %2141 = vmatpush.bf16.msra.mxu3 %v3652_v44 }
 0x99e   :  { %v1873_v10 = vpack.c.bf16 %v1872_v60, %v1872_v60 }
 0x99f   :  { %v1855_v25 = vpop.f32.mrf.mxu2 }
 0x9a0   :  { %v1856_v26 = vadd.f32 %v1855_v25, %v1819_v42  ;;  %1882 = vmatmul.bf16.vlgmr.msrb.gmra.mxu0 %v1873_v10  ;;  %2052 = vmatmul.bf16.vlgmr.msrb.gmra.mxu3 %v1873_v10 }
 0x9a1   :  { %v1844_v33 = vpop.f32.mrf.mxu1  ;;  %2059 = vmatpush.bf16.msrb.mxu0 %v3658_v36 }
 0x9a5   :  { %2060 = vmatpush.bf16.msrb.mxu0 %v3763_v61 }
 0x9a7   :  { %v1857_v16 = vpop.f32.mrf.mxu2 }
 0x9a9   :  { %2061 = vmatpush.bf16.msrb.mxu0 %v3770_v59 }
 0x9ad   :  { %2062 = vmatpush.bf16.msrb.mxu0 %v3777_v12 }
 0x9b1   :  { %2063 = vmatpush.bf16.msrb.mxu0 %v3784_v45 }
 0x9b5   :  { %2064 = vmatpush.bf16.msrb.mxu0 %v3791_v63 }
 0x9b9   :  { %2065 = vmatpush.bf16.msrb.mxu0 %v3798_v11  ;;  %v2009_v11 = vld.sshfl [vmem:[#allocation1] sm:$0xff pattern:$0x73625140] }
 0x9ba   :  { %v2014_v34 = vsel %vm490_vm5, %v2009_v11, 0  ;;  %v2564_v11 = vld [vmem:[%s3971_s14] sm:$0xff] }
 0x9bd   :  { %2066 = vmatpush.bf16.msrb.mxu0 %v3805_v13  ;;  %v2010_v13 = vld.sshfl [vmem:[#allocation1 + $0x8] sm:$0xff pattern:$0x73625140] }
 0x9fd   :  { %v1788_v44 = vpop.f32.mrf.mxu0 }
 0x9fe   :  { %v1792_v23 = vadd.f32 %v1788_v44, %v1761_v40 }
 0xa00   :  { %2610 = vtanh.f32 %v1792_v23 }
 0xa03   :  { %v1958_v41 = vpop.f32.mrf.mxu3 }
 0xa05   :  { %v1790_v36 = vpop.f32.mrf.mxu0 }
 0xa06   :  { %v2611_v43 = vpop.eup %2610 }
 0xa07   :  { %v1890_v61 = vpack.c.bf16 %v2611_v43, %v2611_v43 }
 0xa09   :  { %2488 = vmatmul.msk.bf16.vlgmr.msrb.gmra.mxu1 %vm453_vm10, %v1890_v61  ;;  %2489 = vmatmul.msk.bf16.vlgmr.msra.gmra.mxu2 %vm453_vm10, %v1890_v61 }
 0xa0a   :  { %1988 = vmatpush.bf16.msrb.mxu1 %v3088_v56  ;;  %2001 = vmatpush.bf16.msra.mxu2 %v3152_v22  ;;  %v2016_v56 = vsel %vm490_vm5, %v2010_v13, 0  ;;  %v1981_v22 = vpack.c.bf16 %v3238_v9, %v3238_v9 }
 0xa0b   :  { %v1960_v59 = vpop.f32.mrf.mxu3 }
 0xa0e   :  { %1989 = vmatpush.bf16.msrb.mxu1 %v3091_v58  ;;  %2002 = vmatpush.bf16.msra.mxu2 %v3163_v32 }
 0xa1d   :  { %v1883_v12 = vpop.f32.mrf.mxu0 }
 0xa1e   :  { %v1887_v45 = vadd.f32 %v1883_v12, %v1856_v26 }
 0xa20   :  { %2612 = vtanh.f32 %v1887_v45 }
 0xa23   :  { %v2053_v63 = vpop.f32.mrf.mxu3 }
 0xa25   :  { %v1885_v1 = vpop.f32.mrf.mxu0 }
 0xa26   :  { %v2613_v28 = vpop.eup %2612 }
 0xa27   :  { %v1889_v31 = vpack.c.bf16 %v2613_v28, %v2613_v28 }
 0xa29   :  { %2490 = vmatmul.msk.bf16.vlgmr.msra.gmra.mxu1 %vm453_vm10, %v1889_v31  ;;  %2491 = vmatmul.msk.bf16.vlgmr.msrb.gmra.mxu2 %vm453_vm10, %v1889_v31 }
 0xa2a   :  { %2025 = vmatpush.bf16.msra.mxu1 %v2014_v34  ;;  %2038 = vmatpush.bf16.msrb.mxu2 %v2016_v56 }
 0xa2b   :  { %v2055_v58 = vpop.f32.mrf.mxu3 }
 0xa2c   :  { %v2579_v58 = vld [vmem:[%s3972_s15] ss:$0 sm:$0xff] }
 0xa39   :  { %2492 = vmatmul.msk.bf16.vlgmr.msrb.gmra.mxu1 %vm453_vm10, %v1889_v31  ;;  %2493 = vmatmul.msk.bf16.vlgmr.msra.gmra.mxu2 %vm453_vm10, %v1889_v31 }
 0xa3a   :  { %2085 = vmatpush.bf16.msrb.mxu1 %v3301_v46  ;;  %2098 = vmatpush.bf16.msra.mxu2 %v3303_v52 }
 0xa3e   :  { %2086 = vmatpush.bf16.msrb.mxu1 %v3306_v57  ;;  %2099 = vmatpush.bf16.msra.mxu2 %v3309_v62 }
 0xa49   :  { %2494 = vmatmul.msk.bf16.vlgmr.msra.gmra.mxu1 %vm301_vm1, %v1981_v22  ;;  %2495 = vmatmul.msk.bf16.vlgmr.msrb.gmra.mxu2 %vm301_vm1, %v1981_v22 }
 0xa4a   :  { %2114 = vmatpush.bf16.msra.mxu1 %v3311_v0  ;;  %2127 = vmatpush.bf16.msrb.mxu2 %v3328_v29 }
 0xa4e   :  { %2115 = vmatpush.bf16.msra.mxu1 %v3331_v48  ;;  %2128 = vmatpush.bf16.msrb.mxu2 %v3333_v50 }
 0xa86   :  { %v1903_v32 = vpop.f32.mrf.mxu1 }
 0xa8c   :  { %v1916_v46 = vpop.f32.mrf.mxu2 }
 0xa8e   :  { %v1905_v52 = vpop.f32.mrf.mxu1 }
 0xa94   :  { %v1918_v57 = vpop.f32.mrf.mxu2 }
 0xaa6   :  { %v1932_v62 = vpop.f32.mrf.mxu1 }
 0xaa7   :  { %v1933_v4 = vadd.f32 %v1932_v62, %v1903_v32 }
 0xaa9   :  { %v1962_v38 = vadd.f32 %v1958_v41, %v1933_v4 }
 0xaab   :  { %v1963_v9 = vpack.c.bf16 %v1962_v38, %v1962_v38 }
 0xaac   :  { %v1945_v17 = vpop.f32.mrf.mxu2 }
 0xaad   :  { %v1946_v2 = vadd.f32 %v1945_v17, %v1916_v46  ;;  %1972 = vmatmul.bf16.vlgmr.msra.gmra.mxu0 %v1963_v9  ;;  %2142 = vmatmul.bf16.vlgmr.msra.gmra.mxu3 %v1963_v9 }
 0xaae   :  { %v1934_v37 = vpop.f32.mrf.mxu1  ;;  %2149 = vmatpush.bf16.msra.mxu0 %v3839_v47 }
 0xab2   :  { %2150 = vmatpush.bf16.msra.mxu0 %v3846_v53 }
 0xab4   :  { %v1947_v0 = vpop.f32.mrf.mxu2 }
 0xab6   :  { %v1991_v29 = vpop.f32.mrf.mxu1  ;;  %2151 = vmatpush.bf16.msra.mxu0 %v3853_v19 }
 0xaba   :  { %2152 = vmatpush.bf16.msra.mxu0 %v3860_v18 }
 0xabc   :  { %v2004_v48 = vpop.f32.mrf.mxu2 }
 0xabe   :  { %v1993_v50 = vpop.f32.mrf.mxu1  ;;  %2153 = vmatpush.bf16.msra.mxu0 %v3867_v24  ;;  %v2562_v24 = vld [vmem:[%s3970_s13] sm:$0xff] }
 0xac2   :  { %2154 = vmatpush.bf16.msra.mxu0 %v3874_v3 }
 0xac4   :  { %v2006_v55 = vpop.f32.mrf.mxu2 }
 0xac6   :  { %v2027_v39 = vpop.f32.mrf.mxu1  ;;  %2155 = vmatpush.bf16.msra.mxu0 %v3881_v15 }
 0xac7   :  { %v2028_v30 = vadd.f32 %v2027_v39, %v1991_v29 }
 0xac9   :  { %v2057_v21 = vadd.f32 %v2053_v63, %v2028_v30  ;;  %v2565_v63 = vld [vmem:[%s3971_s14 + $0x8] sm:$0xff] }
 0xaca   :  { %2156 = vmatpush.bf16.msra.mxu0 %v3889_v20 }
 0xacb   :  { %v2058_v7 = vpack.c.bf16 %v2057_v21, %v2057_v21 }
 0xacc   :  { %v2040_v5 = vpop.f32.mrf.mxu2 }
 0xacd   :  { %v2041_v27 = vadd.f32 %v2040_v5, %v2004_v48  ;;  %2067 = vmatmul.bf16.vlgmr.msrb.gmra.mxu0 %v2058_v7 }
 0xace   :  { %v2029_v40 = vpop.f32.mrf.mxu1 }
 0xad4   :  { %v2042_v49 = vpop.f32.mrf.mxu2 }
 0xb2a   :  { %v1973_v47 = vpop.f32.mrf.mxu0 }
 0xb2b   :  { %v1977_v53 = vadd.f32 %v1973_v47, %v1946_v2 }
 0xb2d   :  { %2614 = vtanh.f32 %v1977_v53 }
 0xb30   :  { %v2143_v8 = vpop.f32.mrf.mxu3 }
 0xb32   :  { %v1975_v54 = vpop.f32.mrf.mxu0 }
 0xb33   :  { %v2615_v19 = vpop.eup %2614 }
 0xb34   :  { %v2075_v18 = vpack.c.bf16 %v2615_v19, %v2615_v19 }
 0xb36   :  { %2496 = vmatmul.msk.bf16.vlgmr.msrb.gmra.mxu1 %vm453_vm10, %v2075_v18  ;;  %2497 = vmatmul.msk.bf16.vlgmr.msra.gmra.mxu2 %vm453_vm10, %v2075_v18 }
 0xb37   :  { %2217 = vmatpush.bf16.msra.mxu2 %v2563_v35  ;;  %2189 = vmatpush.bf16.msrb.mxu1 %v2565_v63 }
 0xb38   :  { %v2145_v42 = vpop.f32.mrf.mxu3 }
 0xb3b   :  { %2218 = vmatpush.bf16.msra.mxu2 %v2562_v24  ;;  %2190 = vmatpush.bf16.msrb.mxu1 %v2564_v11 }
 0xb4a   :  { %v2068_v3 = vpop.f32.mrf.mxu0 }
 0xb4b   :  { %v2072_v6 = vadd.f32 %v2068_v3, %v2041_v27 }
 0xb4d   :  { %2616 = vtanh.f32 %v2072_v6 }
 0xb52   :  { %v2070_v14 = vpop.f32.mrf.mxu0 }
 0xb53   :  { %v2617_v15 = vpop.eup %2616 }
 0xb54   :  { %v2074_v51 = vpack.c.bf16 %v2617_v15, %v2617_v15  ;;  %2618 = vtanh.f32 %v2617_v15 }
 0xb56   :  { %2498 = vmatmul.msk.bf16.vlgmr.msra.gmra.mxu1 %vm453_vm10, %v2074_v51  ;;  %2499 = vmatmul.msk.bf16.vlgmr.msrb.gmra.mxu2 %vm453_vm10, %v2074_v51 }
 0xb5a   :  { %v2619_v60 = vpop.eup %2618 }
 0xb5b   :  { %v2165_v20 = vpack.c.bf16 %v2619_v60, %v2619_v60 }
 0xb66   :  { %2517 = vmatmul.msk.bf16.vlgmr.msra.gmra.mxu2 %vm453_vm10, %v2165_v20 }
 0xbb3   :  { %v2088_v10 = vpop.f32.mrf.mxu1 }
 0xbb9   :  { %v2101_v25 = vpop.f32.mrf.mxu2 }
 0xbbb   :  { %v2090_v26 = vpop.f32.mrf.mxu1 }
 0xbc1   :  { %v2103_v33 = vpop.f32.mrf.mxu2 }
 0xbd3   :  { %v2117_v16 = vpop.f32.mrf.mxu1 }
 0xbd4   :  { %v2118_v44 = vadd.f32 %v2117_v16, %v2088_v10 }
 0xbd6   :  { %v2147_v23 = vadd.f32 %v2143_v8, %v2118_v44 }
 0xbd8   :  { %v2148_v41 = vpack.c.bf16 %v2147_v23, %v2147_v23 }
 0xbd9   :  { %v2130_v36 = vpop.f32.mrf.mxu2 }
 0xbda   :  { %v2131_v43 = vadd.f32 %v2130_v36, %v2101_v25  ;;  %2157 = vmatmul.bf16.vlgmr.msra.gmra.mxu0 %v2148_v41 }
 0xbdb   :  { %v2119_v61 = vpop.f32.mrf.mxu1 }
 0xbe1   :  { %v2132_v59 = vpop.f32.mrf.mxu2 }
 0xbe9   :  { %v2220_v12 = vpop.f32.mrf.mxu2 }
 0xbf1   :  { %v2222_v45 = vpop.f32.mrf.mxu2 }
 0xc57   :  { %v2158_v13 = vpop.f32.mrf.mxu0 }
 0xc58   :  { %v2162_v1 = vadd.f32 %v2158_v13, %v2131_v43 }
 0xc5a   :  { %2620 = vtanh.f32 %v2162_v1 }
 0xc5f   :  { %v2160_v28 = vpop.f32.mrf.mxu0 }
 0xc60   :  { %v2621_v31 = vpop.eup %2620 }
 0xc61   :  { %2622 = vtanh.f32 %v2621_v31 }
 0xc67   :  { %v2623_v34 = vpop.eup %2622 }
 0xc68   :  { %v2167_v56 = vpack.c.bf16 %v2623_v34, %v2623_v34 }
 0xc6a   :  { %2508 = vmatmul.msk.bf16.vlgmr.msrb.gmra.mxu1 %vm453_vm10, %v2167_v56 }
 0xce7   :  { %v2192_v22 = vpop.f32.mrf.mxu1 }
 0xce8   :  { %v2221_v32 = vadd.f32 %v2220_v12, %v2192_v22 }
 0xcea   :  { %v2227_v46 = vadd.f32 %v2579_v58, %v2221_v32 }
 0xcec   :  { %2228 = vst [vmem:[#allocation16] sm:$0x3] %v2227_v46 }
 0xced   :  { %2239 = dma.vmem_to_hbm [thread:$0]  %s2235_s0, 32, %s2237_s17, [#allocation4]  }
 0xcef   :  { %v2194_v52 = vpop.f32.mrf.mxu1 }
 0xcf0   :  { %2882 = dma.done.wait [#allocation4], 32  }
 0xcf1   :  { %2883 = vsyncadd [#allocation4], 4294967264 }
 0xcf2   :  { %2244 = vsyncpa [#allocation3], 1 }
 0xcf3   :  { %2245 = vsyncpa [#allocation6], 1 }
 0xcf4   :  { %2246 = vsyncpa [#allocation9], 1 }
 0xcf5   :  { %2247 = vsyncpa [#allocation12], 1 }
 0xcf6   :  { %2248 = vsyncpa [#allocation15], 1 }
 0xcf7   :  { %2249 = vsyncpa [#allocation4], 1 }

</bundles_post_ra>
